<compile_context>
chip_gen: v6e
topology: v6e:2x2x1
jax: 0.10.0
libtpu: 0.0.40
codegen_flags: <defaults>
</compile_context>

<pallas_src>
import jax
import jax.numpy as jnp
from jax.experimental import pallas as pl
from jax.experimental.pallas import tpu as pltpu

STATE_DIM = 14             # len(SnakeGame.get_state())
ACTION_DIM = 4
HIDDEN_DIM = 512 + 256     # 768
K_PAD = 16                 # state_dim zero-padded to the bf16 sublane pack
HEAD_PAD = 128             # fused [mean | log_std | 0-pad] head width
DEFAULT_TILE_B = 512       # max batch-tile (rows per grid step)


def _round_up(n, m):
    return ((n + m - 1) // m) * m


def _cdiv(a, b):
    return (a + b - 1) // b


def _choose_tiling(batch, tile_b):
    """Return (b_pad, tb, n_tiles).

    Batch is padded to a multiple of 16 rows; the tile is chosen so total
    padding waste stays < 16 rows per tile, and we emit >= 2 grid steps when
    there is enough work so both v7x TensorCores participate."""
    b16 = _round_up(max(batch, 1), 16)
    if b16 <= 32:
        return b16, b16, 1                       # tiny batch: one small tile
    n_tiles = max(2, _cdiv(b16, max(tile_b, 16)))  # >=2 tiles for v7x megacore
    tb = _round_up(_cdiv(b16, n_tiles), 16)
    return n_tiles * tb, tb, n_tiles


def _policy_kernel(x_ref, w1_ref, w2_ref, wh_ref, b12_ref, bh_ref, out_ref):
    # Trunk: two MXU matmuls (bf16 operands, f32 accumulation).  Bias add /
    # ReLU / clamp stay in f32 on the VPU (hidden under MXU + DMA).
    x = x_ref[...]                                                   # (tb, 16) bf16

    h1 = jnp.dot(x, w1_ref[...], preferred_element_type=jnp.float32)
    h1 = jnp.maximum(h1 + b12_ref[pl.ds(0, 1), :], 0.0)             # (tb, 768)

    h2 = jnp.dot(h1.astype(jnp.bfloat16), w2_ref[...],
                 preferred_element_type=jnp.float32)
    h2 = jnp.maximum(h2 + b12_ref[pl.ds(1, 1), :], 0.0)             # (tb, 768)

    # Fused head: one lane-dense (tb, 128) matmul; cols 0..3 = mean,
    # cols 4..7 = log_std (clamped), cols 8..127 = zero padding.
    head = jnp.dot(h2.astype(jnp.bfloat16), wh_ref[...],
                   preferred_element_type=jnp.float32)
    head = head + bh_ref[...]                                        # (tb, 128)

    col = jax.lax.broadcasted_iota(jnp.int32, head.shape, 1)
    is_log_std = jnp.logical_and(col >= ACTION_DIM, col < 2 * ACTION_DIM)
    head = jnp.where(is_log_std, jnp.clip(head, -20.0, 2.0), head)

    out_ref[...] = head.astype(out_ref.dtype)                        # unmasked vst, bf16


def policy_forward(x, packed, tile_b=DEFAULT_TILE_B):
    """x: (B, STATE_DIM) float -> (mean, log_std), each (B, ACTION_DIM) f32."""
    B = x.shape[0]
    if B == 0:                                   # empty-grid edge case
        z = jnp.zeros((0, ACTION_DIM), jnp.float32)
        return z, z

    b_pad, tb, n_tiles = _choose_tiling(B, tile_b)

    x_pad = jnp.zeros((b_pad, K_PAD), jnp.bfloat16)
    x_pad = x_pad.at[:B, :STATE_DIM].set(x.astype(jnp.bfloat16))

    grid = (n_tiles,)

    flops = 2 * b_pad * (K_PAD * HIDDEN_DIM
                         + HIDDEN_DIM * HIDDEN_DIM
                         + HIDDEN_DIM * HEAD_PAD)
    bytes_accessed = (int(x_pad.size) * 2
                      + int(packed["w1"].size) * 2
                      + int(packed["w2"].size) * 2
                      + int(packed["wh"].size) * 2
                      + int(packed["b12"].size) * 4
                      + int(packed["bh"].size) * 4
                      + b_pad * HEAD_PAD * 2)

    out = pl.pallas_call(
        _policy_kernel,
        out_shape=jax.ShapeDtypeStruct((b_pad, HEAD_PAD), jnp.bfloat16),
        grid=grid,
        in_specs=[
            pl.BlockSpec((tb, K_PAD), lambda i: (i, 0)),              # x tile (bf16)
            pl.BlockSpec((K_PAD, HIDDEN_DIM), lambda i: (0, 0)),      # w1 (resident)
            pl.BlockSpec((HIDDEN_DIM, HIDDEN_DIM), lambda i: (0, 0)), # w2 (resident)
            pl.BlockSpec((HIDDEN_DIM, HEAD_PAD), lambda i: (0, 0)),   # fused head W
            pl.BlockSpec((2, HIDDEN_DIM), lambda i: (0, 0)),          # [b1; b2] f32
            pl.BlockSpec((1, HEAD_PAD), lambda i: (0, 0)),            # fused head b
        ],
        out_specs=pl.BlockSpec((tb, HEAD_PAD), lambda i: (i, 0)),
        compiler_params=pltpu.CompilerParams(
            dimension_semantics=("parallel",)),
        cost_estimate=pl.CostEstimate(
            flops=flops, transcendentals=0, bytes_accessed=bytes_accessed),
    )(x_pad, packed["w1"], packed["w2"], packed["wh"],
      packed["b12"], packed["bh"])

    mean = out[:B, :ACTION_DIM].astype(jnp.float32)
    log_std = out[:B, ACTION_DIM:2 * ACTION_DIM].astype(jnp.float32)
    return mean, log_std


def init_params(key):
    """Deterministic init mimicking torch.nn.Linear (uniform +-1/sqrt(fan_in)).

    Weights stored as (in_features, out_features) (transposed vs torch)."""
    def linear(k, fan_in, fan_out):
        kw, kb = jax.random.split(k)
        bound = 1.0 / jnp.sqrt(jnp.float32(fan_in))
        w = jax.random.uniform(kw, (fan_in, fan_out), jnp.float32, -bound, bound)
        b = jax.random.uniform(kb, (fan_out,), jnp.float32, -bound, bound)
        return w, b

    k1, k2, k3, k4 = jax.random.split(key, 4)
    w1, b1 = linear(k1, STATE_DIM, HIDDEN_DIM)
    w2, b2 = linear(k2, HIDDEN_DIM, HIDDEN_DIM)
    wm, bm = linear(k3, HIDDEN_DIM, ACTION_DIM)
    wls, bls = linear(k4, HIDDEN_DIM, ACTION_DIM)
    return dict(w1=w1, b1=b1, w2=w2, b2=b2, wm=wm, bm=bm, wls=wls, bls=bls)


def pack_params(raw):
    """Pad / fuse / cast raw f32 params into the kernel layout."""
    w1 = jnp.zeros((K_PAD, HIDDEN_DIM), jnp.float32).at[:STATE_DIM, :].set(raw["w1"])
    wh = jnp.zeros((HIDDEN_DIM, HEAD_PAD), jnp.float32)
    wh = wh.at[:, :ACTION_DIM].set(raw["wm"])
    wh = wh.at[:, ACTION_DIM:2 * ACTION_DIM].set(raw["wls"])
    bh = jnp.zeros((1, HEAD_PAD), jnp.float32)
    bh = bh.at[0, :ACTION_DIM].set(raw["bm"])
    bh = bh.at[0, ACTION_DIM:2 * ACTION_DIM].set(raw["bls"])
    return dict(
        w1=w1.astype(jnp.bfloat16),                      # (16, 768) bf16
        w2=raw["w2"].astype(jnp.bfloat16),               # (768, 768) bf16
        wh=wh.astype(jnp.bfloat16),                      # (768, 128) bf16
        b12=jnp.stack([raw["b1"], raw["b2"]], axis=0),   # (2, 768) f32
        bh=bh,                                           # (1, 128) f32
    )


def policy_forward_ref(x, raw, weights_dtype=jnp.float32):
    """Pure-JAX reference of the PyTorch forward (optionally bf16-rounded weights)."""
    def cast(w):
        return w.astype(weights_dtype).astype(jnp.float32)
    h1 = jnp.maximum(x @ cast(raw["w1"]) + raw["b1"], 0.0)
    h2 = jnp.maximum(h1 @ cast(raw["w2"]) + raw["b2"], 0.0)
    mean = h2 @ cast(raw["wm"]) + raw["bm"]
    log_std = jnp.clip(h2 @ cast(raw["wls"]) + raw["bls"], -20.0, 2.0)
    return mean, log_std


if __name__ == "__main__":
    key = jax.random.PRNGKey(0)
    k_params, k_x = jax.random.split(key)

    raw = init_params(k_params)
    packed = pack_params(raw)

    # Small batch (single 16-row tile).
    batch = 2
    x = jax.random.normal(k_x, (batch, STATE_DIM), jnp.float32)
    mean, log_std = policy_forward(x, packed)
    jax.block_until_ready((mean, log_std))

    # Compare against a reference that uses the same bf16-rounded weights; the
    # remaining difference is bf16 rounding of x / activations / output.
    mean_ref, log_std_ref = policy_forward_ref(x, raw, weights_dtype=jnp.bfloat16)
    assert mean.shape == (batch, ACTION_DIM)
    assert log_std.shape == (batch, ACTION_DIM)
    assert jnp.allclose(mean, mean_ref, atol=5e-2, rtol=5e-2)
    assert jnp.allclose(log_std, log_std_ref, atol=5e-2, rtol=5e-2)
    assert bool(jnp.all(log_std <= 2.0)) and bool(jnp.all(log_std >= -20.0))

    # Awkward batch size exercising the multi-tile grid (2 tiles of 32 rows,
    # only 16 rows of padding instead of a full tile).
    batch2 = 48
    x2 = jax.random.normal(jax.random.fold_in(k_x, 1), (batch2, STATE_DIM),
                           jnp.float32)
    mean2, log_std2 = policy_forward(x2, packed)
    jax.block_until_ready((mean2, log_std2))
    mean2_ref, log_std2_ref = policy_forward_ref(x2, raw,
                                                 weights_dtype=jnp.bfloat16)
    assert mean2.shape == (batch2, ACTION_DIM)
    assert jnp.allclose(mean2, mean2_ref, atol=5e-2, rtol=5e-2)
    assert jnp.allclose(log_std2, log_std2_ref, atol=5e-2, rtol=5e-2)

    print("KERNEL_OK")
</pallas_src>

<mosaic_0001>
module attributes {stable_mosaic.version = 11 : i64} {
  func.func @_policy_kernel(%arg0: i32, %arg1: memref<16x16xbf16, #tpu.memory_space<vmem>>, %arg2: memref<16x768xbf16, #tpu.memory_space<vmem>>, %arg3: memref<768x768xbf16, #tpu.memory_space<vmem>>, %arg4: memref<768x128xbf16, #tpu.memory_space<vmem>>, %arg5: memref<2x768xf32, #tpu.memory_space<vmem>>, %arg6: memref<1x128xf32, #tpu.memory_space<vmem>>, %arg7: memref<16x128xbf16, #tpu.memory_space<vmem>>) attributes {dimension_semantics = [#tpu.dimension_semantics<parallel>], iteration_bounds = array<i64: 1>, scalar_prefetch = 0 : i64, scratch_operands = 0 : i64, tpu.core_type = #tpu.core_type<tc>, window_params = [{transform_indices = @transform_0, window_bounds = array<i64: 16, 16>}, {pipeline_mode = #tpu.pipeline_mode<synchronous>, transform_indices = @transform_1, window_bounds = array<i64: 16, 768>}, {pipeline_mode = #tpu.pipeline_mode<synchronous>, transform_indices = @transform_2, window_bounds = array<i64: 768, 768>}, {pipeline_mode = #tpu.pipeline_mode<synchronous>, transform_indices = @transform_3, window_bounds = array<i64: 768, 128>}, {pipeline_mode = #tpu.pipeline_mode<synchronous>, transform_indices = @transform_4, window_bounds = array<i64: 2, 768>}, {pipeline_mode = #tpu.pipeline_mode<synchronous>, transform_indices = @transform_5, window_bounds = array<i64: 1, 128>}, {transform_indices = @transform_6, window_bounds = array<i64: 16, 128>}]} {
    %c0 = arith.constant 0 : index
    %c0_0 = arith.constant 0 : index
    %0 = vector.load %arg1[%c0, %c0_0] : memref<16x16xbf16, #tpu.memory_space<vmem>>, vector<16x16xbf16>
    %c0_1 = arith.constant 0 : index
    %c0_2 = arith.constant 0 : index
    %1 = vector.load %arg2[%c0_1, %c0_2] : memref<16x768xbf16, #tpu.memory_space<vmem>>, vector<16x768xbf16>
    %cst = arith.constant dense<0.000000e+00> : vector<16x768xf32>
    %2 = tpu.matmul %0, %1, %cst {dimension_numbers = #tpu.dot_dimension_numbers<[1], [0], [0], [1], [0, 0, 1, 1], [], []>} : vector<16x16xbf16>, vector<16x768xbf16>, vector<16x768xf32> -> vector<16x768xf32>
    %c0_3 = arith.constant 0 : index
    %c0_4 = arith.constant 0 : index
    %3 = vector.load %arg5[%c0_3, %c0_4] : memref<2x768xf32, #tpu.memory_space<vmem>>, vector<1x768xf32>
    %4 = vector.broadcast %3 : vector<1x768xf32> to vector<16x768xf32>
    %5 = arith.addf %2, %4 : vector<16x768xf32>
    %cst_5 = arith.constant 0.000000e+00 : f32
    %6 = vector.broadcast %cst_5 : f32 to vector<16x768xf32>
    %7 = arith.maximumf %5, %6 : vector<16x768xf32>
    %8 = arith.truncf %7 : vector<16x768xf32> to vector<16x768xbf16>
    %c0_6 = arith.constant 0 : index
    %c0_7 = arith.constant 0 : index
    %9 = vector.load %arg3[%c0_6, %c0_7] : memref<768x768xbf16, #tpu.memory_space<vmem>>, vector<768x768xbf16>
    %cst_8 = arith.constant dense<0.000000e+00> : vector<16x768xf32>
    %10 = tpu.matmul %8, %9, %cst_8 {dimension_numbers = #tpu.dot_dimension_numbers<[1], [0], [0], [1], [0, 0, 1, 1], [], []>} : vector<16x768xbf16>, vector<768x768xbf16>, vector<16x768xf32> -> vector<16x768xf32>
    %c1 = arith.constant 1 : index
    %c0_9 = arith.constant 0 : index
    %11 = vector.load %arg5[%c1, %c0_9] : memref<2x768xf32, #tpu.memory_space<vmem>>, vector<1x768xf32>
    %12 = vector.broadcast %11 : vector<1x768xf32> to vector<16x768xf32>
    %13 = arith.addf %10, %12 : vector<16x768xf32>
    %cst_10 = arith.constant 0.000000e+00 : f32
    %14 = vector.broadcast %cst_10 : f32 to vector<16x768xf32>
    %15 = arith.maximumf %13, %14 : vector<16x768xf32>
    %16 = arith.truncf %15 : vector<16x768xf32> to vector<16x768xbf16>
    %c0_11 = arith.constant 0 : index
    %c0_12 = arith.constant 0 : index
    %17 = vector.load %arg4[%c0_11, %c0_12] : memref<768x128xbf16, #tpu.memory_space<vmem>>, vector<768x128xbf16>
    %cst_13 = arith.constant dense<0.000000e+00> : vector<16x128xf32>
    %18 = tpu.matmul %16, %17, %cst_13 {dimension_numbers = #tpu.dot_dimension_numbers<[1], [0], [0], [1], [0, 0, 1, 1], [], []>} : vector<16x768xbf16>, vector<768x128xbf16>, vector<16x128xf32> -> vector<16x128xf32>
    %c0_14 = arith.constant 0 : index
    %c0_15 = arith.constant 0 : index
    %19 = vector.load %arg6[%c0_14, %c0_15] : memref<1x128xf32, #tpu.memory_space<vmem>>, vector<1x128xf32>
    %20 = vector.broadcast %19 : vector<1x128xf32> to vector<16x128xf32>
    %21 = arith.addf %18, %20 : vector<16x128xf32>
    %22 = tpu.iota {dimensions = array<i32: 1>} : vector<16x128xi32>
    %c4_i32 = arith.constant 4 : i32
    %23 = vector.broadcast %c4_i32 : i32 to vector<16x128xi32>
    %24 = arith.cmpi sge, %22, %23 : vector<16x128xi32>
    %c8_i32 = arith.constant 8 : i32
    %25 = vector.broadcast %c8_i32 : i32 to vector<16x128xi32>
    %26 = arith.cmpi slt, %22, %25 : vector<16x128xi32>
    %27 = arith.andi %24, %26 : vector<16x128xi1>
    %cst_16 = arith.constant -2.000000e+01 : f32
    %cst_17 = arith.constant 2.000000e+00 : f32
    %28 = vector.broadcast %cst_16 : f32 to vector<16x128xf32>
    %29 = arith.maximumf %28, %21 : vector<16x128xf32>
    %30 = vector.broadcast %cst_17 : f32 to vector<16x128xf32>
    %31 = arith.minimumf %30, %29 : vector<16x128xf32>
    %32 = arith.select %27, %31, %21 : vector<16x128xi1>, vector<16x128xf32>
    %33 = arith.truncf %32 : vector<16x128xf32> to vector<16x128xbf16>
    %c0_18 = arith.constant 0 : index
    %c0_19 = arith.constant 0 : index
    %34 = vector.load %arg7[%c0_18, %c0_19] : memref<16x128xbf16, #tpu.memory_space<vmem>>, vector<16x128xbf16>
    tpu.vector_store %arg7[%c0_18, %c0_19], %33 {strides = array<i32>} : memref<16x128xbf16, #tpu.memory_space<vmem>>, vector<16x128xbf16>,
    return
  }
  func.func @transform_0(%arg0: i32) -> (i32, i32) {
    %c0_i32 = arith.constant 0 : i32
    %c0_i32_0 = arith.constant 0 : i32
    return %arg0, %c0_i32 : i32, i32
  }
  func.func @transform_1(%arg0: i32) -> (i32, i32) {
    %c0_i32 = arith.constant 0 : i32
    %c0_i32_0 = arith.constant 0 : i32
    %c0_i32_1 = arith.constant 0 : i32
    return %c0_i32, %c0_i32_0 : i32, i32
  }
  func.func @transform_2(%arg0: i32) -> (i32, i32) {
    %c0_i32 = arith.constant 0 : i32
    %c0_i32_0 = arith.constant 0 : i32
    %c0_i32_1 = arith.constant 0 : i32
    return %c0_i32, %c0_i32_0 : i32, i32
  }
  func.func @transform_3(%arg0: i32) -> (i32, i32) {
    %c0_i32 = arith.constant 0 : i32
    %c0_i32_0 = arith.constant 0 : i32
    %c0_i32_1 = arith.constant 0 : i32
    return %c0_i32, %c0_i32_0 : i32, i32
  }
  func.func @transform_4(%arg0: i32) -> (i32, i32) {
    %c0_i32 = arith.constant 0 : i32
    %c0_i32_0 = arith.constant 0 : i32
    %c0_i32_1 = arith.constant 0 : i32
    return %c0_i32, %c0_i32_0 : i32, i32
  }
  func.func @transform_5(%arg0: i32) -> (i32, i32) {
    %c0_i32 = arith.constant 0 : i32
    %c0_i32_0 = arith.constant 0 : i32
    %c0_i32_1 = arith.constant 0 : i32
    return %c0_i32, %c0_i32_0 : i32, i32
  }
  func.func @transform_6(%arg0: i32) -> (i32, i32) {
    %c0_i32 = arith.constant 0 : i32
    %c0_i32_0 = arith.constant 0 : i32
    return %arg0, %c0_i32 : i32, i32
  }
}

</mosaic_0001>

<bundles_post_ra>
// kernel: tpu_custom_call.1
= control target key start
LH: loop header
LB: loop body
LE: loop exit
PB: predicated region body
PF: predicated region fallthrough
CT: control target
= control target key end

     0   :  { %11 = vsyncpa [#allocation3], 0  ;;  %s4296_s0 = inlined_call_operand.hbm [shape: bf16[16,16], index: 0, kind: input, shape index: {}]   ;;  %s4297_s1 = inlined_call_operand.hbm [shape: bf16[16,768], index: 1, kind: input, shape index: {}]   ;;  %s4298_s2 = inlined_call_operand.hbm [shape: bf16[768,768], index: 2, kind: input, shape index: {}]   ;;  %s4299_s3 = inlined_call_operand.hbm [shape: bf16[768,128], index: 3, kind: input, shape index: {}]   ;;  %s4300_s4 = inlined_call_operand.hbm [shape: f32[2,768], index: 4, kind: input, shape index: {}]   ;;  %s4301_s5 = inlined_call_operand.hbm [shape: f32[1,128], index: 5, kind: input, shape index: {}]   ;;  %s4302_s6 = inlined_call_operand.hbm [shape: bf16[16,128], index: 6, kind: output, shape index: {}]  }
   0x1   :  { %12 = vsyncpa [#allocation6], 0 }
   0x2   :  { %13 = vsyncpa [#allocation9], 0 }
   0x3   :  { %14 = vsyncpa [#allocation12], 0 }
   0x4   :  { %15 = vsyncpa [#allocation4], 0  ;;  %s4124_s21 = smov [#allocation5]  }
   0x5   :  { %s33_s22 = sshll.u32 %s4124_s21, 4  ;;  %s34_s22 = int_to_ptr.vmem [resolvable:$true] %s33_s22 }
   0x6   :  { %s3982_s23 = scalar_lea.vmem %s34_s22, 768  ;;  %p3987_p1 = scmp.lt.s32.totalorder %s34_s22, %s34_s22 }
   0x7   :  { %p3983_p0 = scmp.ne.s32.totalorder %s34_s22, %s3982_s23  ;;  %p3988_p2 = scmp.lt.s32.totalorder %s3982_s23, %s3982_s23 }
   0x9   :  { %p3989_p3 = por %p3988_p2, %p3987_p1 }
   0xb   :  { %p3990_p4 = pnand %p3989_p3, %p3983_p0 }
   0xd   :  { %3993 = shalt.err (!%p3990_p4)
}
   0xe   :  { %s4125_s24 = smov 384   ;;  %s4126_s25 = smov 24  }
   0xf   :  { %39 = dma.hbm_to_vmem [thread:$0]  %s4297_s1, 768, %s34_s22, [#allocation6], %s4125_s24, %s4125_s24, %s4126_s25  }
  0x10   :  { %s4127_s28 = smov [#allocation8]   ;;  %s4128_s30 = smov [#allocation2]  }
  0x11   :  { %s57_s29 = sshll.u32 %s4127_s28, 4  ;;  %s21_s7 = sshll.u32 %s4128_s30, 4  ;;  %s58_s29 = int_to_ptr.vmem [resolvable:$true] %s57_s29  ;;  %s22_s7 = int_to_ptr.vmem [resolvable:$true] %s21_s7 }
  0x12   :  { %s4002_s8 = scalar_lea.vmem %s58_s29, 6144  ;;  %p4007_p6 = scmp.lt.s32.totalorder %s58_s29, %s58_s29 }
  0x13   :  { %p4003_p5 = scmp.ne.s32.totalorder %s58_s29, %s4002_s8  ;;  %p4008_p7 = scmp.lt.s32.totalorder %s4002_s8, %s4002_s8 }
  0x15   :  { %p4009_p8 = por %p4008_p7, %p4007_p6 }
  0x17   :  { %p4010_p9 = pnand %p4009_p8, %p4003_p5 }
  0x19   :  { %4013 = shalt.err (!%p4010_p9)
}
  0x1a   :  { %s4129_s9 = smov 64   ;;  %s4130_s10 = smov 4  }
  0x1b   :  { %63 = dma.hbm_to_vmem [thread:$0]  %s4299_s3, 6144, %s58_s29, [#allocation9], %s4129_s9, %s4129_s9, %s4130_s10  }
  0x1c   :  { %s4022_s1 = scalar_lea.vmem %s22_s7, 128  ;;  %p4027_p11 = scmp.lt.s32.totalorder %s22_s7, %s22_s7 }
  0x1d   :  { %p4023_p10 = scmp.ne.s32.totalorder %s22_s7, %s4022_s1  ;;  %p4028_p12 = scmp.lt.s32.totalorder %s4022_s1, %s4022_s1 }
  0x1f   :  { %p4029_p13 = por %p4028_p12, %p4027_p11 }
  0x21   :  { %p4030_p0 = pnand %p4029_p13, %p4023_p10 }
  0x23   :  { %4033 = shalt.err (!%p4030_p0)
}
  0x24   :  { %27 = dma.hbm_to_vmem [thread:$0]  %s4296_s0, 128, %s22_s7, [#allocation3], %s4129_s9, %s4129_s9, %s4130_s10  }
  0x25   :  { %s4131_s15 = smov [#allocation7]   ;;  %s4132_s17 = smov [#allocation10]  }
  0x26   :  { %s45_s16 = sshll.u32 %s4131_s15, 4  ;;  %s70_s3 = sshll.u32 %s4132_s17, 4  ;;  %s46_s16 = int_to_ptr.vmem [resolvable:$true] %s45_s16  ;;  %s71_s3 = int_to_ptr.vmem [resolvable:$true] %s70_s3 }
  0x27   :  { %s4042_s18 = scalar_lea.vmem %s46_s16, 36864  ;;  %p4047_p2 = scmp.lt.s32.totalorder %s46_s16, %s46_s16 }
  0x28   :  { %p4043_p1 = scmp.ne.s32.totalorder %s46_s16, %s4042_s18  ;;  %p4048_p3 = scmp.lt.s32.totalorder %s4042_s18, %s4042_s18 }
  0x2a   :  { %p4049_p4 = por %p4048_p3, %p4047_p2 }
  0x2c   :  { %p4050_p5 = pnand %p4049_p4, %p4043_p1 }
  0x2e   :  { %4053 = shalt.err (!%p4050_p5)
}
  0x2f   :  { %51 = dma.hbm_to_vmem [thread:$0]  %s4298_s2, 36864, %s46_s16, [#allocation6], %s4125_s24, %s4125_s24, %s4126_s25  }
  0x30   :  { %s4062_s0 = scalar_lea.vmem %s71_s3, 192  ;;  %p4067_p7 = scmp.lt.s32.totalorder %s71_s3, %s71_s3 }
  0x31   :  { %p4063_p6 = scmp.ne.s32.totalorder %s71_s3, %s4062_s0  ;;  %p4068_p8 = scmp.lt.s32.totalorder %s4062_s0, %s4062_s0 }
  0x33   :  { %p4069_p9 = por %p4068_p8, %p4067_p7 }
  0x35   :  { %p4070_p10 = pnand %p4069_p9, %p4063_p6 }
  0x37   :  { %4073 = shalt.err (!%p4070_p10)
}
  0x38   :  { %73 = dma.hbm_to_vmem [thread:$0]  %s4300_s4, 192, %s71_s3, [#allocation9]  }
  0x39   :  { %s4133_s23 = smov [#allocation11]  }
  0x3a   :  { %s80_s26 = sshll.u32 %s4133_s23, 4  ;;  %s81_s26 = int_to_ptr.vmem [resolvable:$true] %s80_s26 }
  0x3b   :  { %s4082_s27 = scalar_lea.vmem %s81_s26, 16  ;;  %s4086_s28 = scalar_lea.vmem %s81_s26, 32 }
  0x3c   :  { %p4083_p11 = scmp.ne.s32.totalorder %s81_s26, %s4082_s27  ;;  %p4087_p12 = scmp.lt.s32.totalorder %s81_s26, %s81_s26 }
  0x3d   :  { %p4088_p13 = scmp.lt.s32.totalorder %s4086_s28, %s4082_s27 }
  0x3f   :  { %p4089_p0 = por %p4088_p13, %p4087_p12 }
  0x41   :  { %p4090_p1 = pnand %p4089_p0, %p4083_p11 }
  0x43   :  { %4093 = shalt.err (!%p4090_p1)
}
  0x44   :  { %83 = dma.hbm_to_vmem [thread:$0]  %s4301_s5, 16, %s81_s26, [#allocation12]  }
  0x45   :  { %4114 = dma.done.wait [#allocation3], 128  }
  0x46   :  { %4115 = vsyncadd [#allocation3], 4294967168 }
  0x47   :  { %4116 = dma.done.wait [#allocation6], 37632  }
  0x48   :  { %4117 = vsyncadd [#allocation6], 4294929664 }
  0x49   :  { %4118 = dma.done.wait [#allocation9], 6336  }
  0x4a   :  { %4119 = vsyncadd [#allocation9], 4294960960 }
  0x4b   :  { %4120 = dma.done.wait [#allocation12], 16  }
  0x4c   :  { %4121 = vsyncadd [#allocation12], 4294967280  ;;  %v4134_v0 = vmov 0   ;;  %v3484_v1 = vld [vmem:[#allocation5 + $0x4] ss:$24 sps:$4 sm:$0xff]   ;;  %vm178_vm0 = vcmask 130048  }
  0x4d   :  { %214 = vmatprep.mubr.bf16.mxu0 %v4134_v0  ;;  %v3486_v2 = vld [vmem:[#allocation5] ss:$24 sps:$4 sm:$0xff]   ;;  %196 = vmatprep.subr.bf16.mxu0 %v3484_v1  ;;  %v3490_v5 = vld [vmem:[#allocation5 + $0xc] ss:$24 sps:$4 sm:$0xff]   ;;  %v3499_v10 = vld [vmem:[#allocation7 + $0x120] ss:$24 sps:$4 sm:$0xff]  }
  0x4e   :  { %v3487_v3 = vld [vmem:[#allocation2] sm:$0xff]   ;;  %197 = vmatpush1.bf16.msra.mxu0 %v3486_v2  ;;  %v3488_v4 = vld [vmem:[#allocation5 + $0x8] ss:$24 sps:$4 sm:$0xff]   ;;  %v3493_v6 = vld [vmem:[#allocation5 + $0x14] ss:$24 sps:$4 sm:$0xff]   ;;  %s4135_s4 = smov [#allocation13]  }
  0x4f   :  { %239 = vmatprep.subr.bf16.mxu0 %v3490_v5  ;;  %v3494_v7 = vld [vmem:[#allocation7 + $0x154] ss:$24 sps:$4 sm:$0xff]   ;;  %v3496_v8 = vld [vmem:[#allocation7 + $0x150] ss:$24 sps:$4 sm:$0xff]   ;;  %v3497_v9 = vld [vmem:[#allocation7 + $0x124] ss:$24 sps:$4 sm:$0xff]  }
  0x50   :  { %2090 = vmatprep.subr.bf16.mxu1 %v3494_v7  ;;  %v3500_v11 = vld [vmem:[#allocation7 + $0xf4] ss:$24 sps:$4 sm:$0xff]   ;;  %v3491_v12 = vld [vmem:[#allocation5 + $0x10] ss:$24 sps:$4 sm:$0xff]   ;;  %v3505_v14 = vld [vmem:[#allocation7 + $0xf0] ss:$24 sps:$4 sm:$0xff]  }
  0x51   :  { %3057 = vmatmul.mubr.msk.bf16.vlgmr.msra.gmra.mxu0 %vm178_vm0, %v3487_v3  ;;  %2091 = vmatpush1.bf16.msra.mxu1 %v3496_v8  ;;  %v3504_v13 = vld [vmem:[#allocation7 + $0x454] ss:$24 sps:$4 sm:$0xff]   ;;  %v3506_v15 = vld [vmem:[#allocation7 + $0xc4] ss:$24 sps:$4 sm:$0xff]   ;;  %v3511_v16 = vld [vmem:[#allocation7 + $0xc0] ss:$24 sps:$4 sm:$0xff]  }
  0x52   :  { %240 = vmatpush1.bf16.msra.mxu0 %v3488_v4  ;;  %257 = vmatprep.mubr.bf16.mxu0 %v4134_v0  ;;  %v3512_v17 = vld [vmem:[#allocation7 + $0x94] ss:$24 sps:$4 sm:$0xff]   ;;  %v3502_v18 = vld [vmem:[#allocation7 + $0x450] ss:$24 sps:$4 sm:$0xff]   ;;  %v3510_v19 = vld [vmem:[#allocation7 + $0x424] ss:$24 sps:$4 sm:$0xff]  }
  0x53   :  { %282 = vmatprep.subr.bf16.mxu0 %v3493_v6  ;;  %2092 = vmatprep.subr.bf16.mxu1 %v3497_v9  ;;  %v3517_v20 = vld [vmem:[#allocation7 + $0x90] ss:$24 sps:$4 sm:$0xff]   ;;  %v3518_v21 = vld [vmem:[#allocation7 + $0x64] ss:$24 sps:$4 sm:$0xff]   ;;  %v3508_v22 = vld [vmem:[#allocation7 + $0x420] ss:$24 sps:$4 sm:$0xff]  }
  0x54   :  { %v3516_v23 = vld [vmem:[#allocation7 + $0x3f4] ss:$24 sps:$4 sm:$0xff]   ;;  %v3523_v24 = vld [vmem:[#allocation7 + $0x60] ss:$24 sps:$4 sm:$0xff]   ;;  %v3514_v26 = vld [vmem:[#allocation7 + $0x3f0] ss:$24 sps:$4 sm:$0xff]  }
  0x55   :  { %2093 = vmatpush1.bf16.msra.mxu1 %v3499_v10  ;;  %v3524_v25 = vld [vmem:[#allocation7 + $0x34] ss:$24 sps:$4 sm:$0xff]   ;;  %v3522_v27 = vld [vmem:[#allocation7 + $0x3c4] ss:$24 sps:$4 sm:$0xff]   ;;  %v3529_v28 = vld [vmem:[#allocation7 + $0x30] ss:$24 sps:$4 sm:$0xff]   ;;  %v113_v10 = vlaneseq }
  0x56   :  { %2094 = vmatprep.subr.bf16.mxu1 %v3500_v11  ;;  %v3530_v29 = vld [vmem:[#allocation7 + $0x4] ss:$24 sps:$4 sm:$0xff]   ;;  %v3520_v30 = vld [vmem:[#allocation7 + $0x3c0] ss:$24 sps:$4 sm:$0xff]   ;;  %v3528_v31 = vld [vmem:[#allocation7 + $0x394] ss:$24 sps:$4 sm:$0xff]  }
  0x57   :  { %v3535_v32 = vld [vmem:[#allocation7] ss:$24 sps:$4 sm:$0xff]   ;;  %v3536_v33 = vld [vmem:[#allocation7 + $0x2d4] ss:$24 sps:$4 sm:$0xff]   ;;  %v3526_v34 = vld [vmem:[#allocation7 + $0x390] ss:$24 sps:$4 sm:$0xff]  }
  0x58   :  { %v3534_v35 = vld [vmem:[#allocation7 + $0x364] ss:$24 sps:$4 sm:$0xff]   ;;  %v3541_v36 = vld [vmem:[#allocation7 + $0x2d0] ss:$24 sps:$4 sm:$0xff]   ;;  %v3532_v37 = vld [vmem:[#allocation7 + $0x360] ss:$24 sps:$4 sm:$0xff]  }
  0x59   :  { %3058 = vmatmul.mubr.msk.bf16.vlgmr.msra.gmra.mxu0 %vm178_vm0, %v3487_v3  ;;  %2095 = vmatpush1.bf16.msra.mxu1 %v3505_v14  ;;  %v3542_v38 = vld [vmem:[#allocation7 + $0x2a4] ss:$24 sps:$4 sm:$0xff]   ;;  %v3540_v39 = vld [vmem:[#allocation7 + $0x334] ss:$24 sps:$4 sm:$0xff]   ;;  %v3547_v40 = vld [vmem:[#allocation7 + $0x2a0] ss:$24 sps:$4 sm:$0xff]  }
  0x5a   :  { %283 = vmatpush1.bf16.msra.mxu0 %v3491_v12  ;;  %300 = vmatprep.mubr.bf16.mxu0 %v4134_v0  ;;  %v3548_v41 = vld [vmem:[#allocation7 + $0x274] ss:$24 sps:$4 sm:$0xff]   ;;  %v3538_v42 = vld [vmem:[#allocation7 + $0x330] ss:$24 sps:$4 sm:$0xff]   ;;  %v3546_v43 = vld [vmem:[#allocation7 + $0x304] ss:$24 sps:$4 sm:$0xff]  }
  0x5b   :  { %2133 = vmatprep.subr.bf16.mxu0 %v3504_v13  ;;  %2096 = vmatprep.subr.bf16.mxu1 %v3506_v15  ;;  %v3553_v44 = vld [vmem:[#allocation7 + $0x270] ss:$24 sps:$4 sm:$0xff]   ;;  %v3554_v45 = vld [vmem:[#allocation7 + $0x244] ss:$24 sps:$4 sm:$0xff]   ;;  %v3544_v46 = vld [vmem:[#allocation7 + $0x300] ss:$24 sps:$4 sm:$0xff]  }
  0x5c   :  { %v3552_v47 = vld [vmem:[#allocation7 + $0x5d4] ss:$24 sps:$4 sm:$0xff]   ;;  %v3559_v48 = vld [vmem:[#allocation7 + $0x240] ss:$24 sps:$4 sm:$0xff]   ;;  %v3550_v50 = vld [vmem:[#allocation7 + $0x5d0] ss:$24 sps:$4 sm:$0xff]  }
  0x5d   :  { %2097 = vmatpush1.bf16.msra.mxu1 %v3511_v16  ;;  %v3560_v49 = vld [vmem:[#allocation7 + $0x214] ss:$24 sps:$4 sm:$0xff]   ;;  %v3558_v51 = vld [vmem:[#allocation7 + $0x5a4] ss:$24 sps:$4 sm:$0xff]   ;;  %v3565_v52 = vld [vmem:[#allocation7 + $0x210] ss:$24 sps:$4 sm:$0xff]  }
  0x5e   :  { %2098 = vmatprep.subr.bf16.mxu1 %v3512_v17  ;;  %v3556_v53 = vld [vmem:[#allocation7 + $0x5a0] ss:$24 sps:$4 sm:$0xff]   ;;  %v3564_v54 = vld [vmem:[#allocation7 + $0x574] ss:$24 sps:$4 sm:$0xff]   ;;  %v3562_v55 = vld [vmem:[#allocation7 + $0x570] ss:$24 sps:$4 sm:$0xff]  }
  0x5f   :  { %v3566_v56 = vld [vmem:[#allocation7 + $0x1e4] ss:$24 sps:$4 sm:$0xff]   ;;  %v3568_v58 = vld [vmem:[#allocation7 + $0x540] ss:$24 sps:$4 sm:$0xff]   ;;  %v3572_v60 = vld [vmem:[#allocation7 + $0x1b4] ss:$24 sps:$4 sm:$0xff]  }
  0x60   :  { %v3570_v57 = vld [vmem:[#allocation7 + $0x544] ss:$24 sps:$4 sm:$0xff]   ;;  %v3571_v59 = vld [vmem:[#allocation7 + $0x1e0] ss:$24 sps:$4 sm:$0xff]   ;;  %v3576_v61 = vld [vmem:[#allocation7 + $0x514] ss:$24 sps:$4 sm:$0xff]  }
  0x61   :  { %3059 = vmatmul.mubr.msk.bf16.vlgmr.msra.gmra.mxu0 %vm178_vm0, %v3487_v3  ;;  %2099 = vmatpush1.bf16.msra.mxu1 %v3517_v20  ;;  %v3574_v62 = vld [vmem:[#allocation7 + $0x510] ss:$24 sps:$4 sm:$0xff]   ;;  %v3578_v0 = vld [vmem:[#allocation7 + $0x184] ss:$24 sps:$4 sm:$0xff]   ;;  %v3580_v2 = vld [vmem:[#allocation7 + $0x4e0] ss:$24 sps:$4 sm:$0xff]  }
  0x62   :  { %2134 = vmatpush1.bf16.msra.mxu0 %v3502_v18  ;;  %2100 = vmatprep.subr.bf16.mxu1 %v3518_v21  ;;  %v3577_v63 = vld [vmem:[#allocation7 + $0x1b0] ss:$24 sps:$4 sm:$0xff]   ;;  %v3582_v1 = vld [vmem:[#allocation7 + $0x4e4] ss:$24 sps:$4 sm:$0xff]   ;;  %v3583_v3 = vld [vmem:[#allocation7 + $0x180] ss:$24 sps:$4 sm:$0xff]  }
  0x63   :  { %2135 = vmatprep.subr.bf16.mxu0 %v3510_v19  ;;  %v3586_v4 = vld [vmem:[#allocation7 + $0x4b4] ss:$24 sps:$4 sm:$0xff]   ;;  %v3584_v6 = vld [vmem:[#allocation7 + $0x4b0] ss:$24 sps:$4 sm:$0xff]   ;;  %v3592_v7 = vld [vmem:[#allocation7 + $0x484] ss:$24 sps:$4 sm:$0xff]  }
  0x64   :  { %v3589_v5 = vld [vmem:[#allocation7 + $0x754] ss:$24 sps:$4 sm:$0xff]   ;;  %v3590_v8 = vld [vmem:[#allocation7 + $0x480] ss:$24 sps:$4 sm:$0xff]   ;;  %v4205_v11 = vshrl.u32 %v113_v10, 7  ;;  %s3035_s5 = sshll.u32 %s4135_s4, 4  ;;  %s3036_s5 = int_to_ptr.vmem [resolvable:$true] %s3035_s5 }
  0x65   :  { %2101 = vmatpush1.bf16.msra.mxu1 %v3523_v24  ;;  %v3601_v9 = vld [vmem:[#allocation7 + $0x15c] ss:$24 sps:$4 sm:$0xff]   ;;  %v4209_v14 = vld [vmem:[#allocation10] ss:$2 sm:$0x3f]  ;;  %s4094_s25 = scalar_lea.vmem %s3036_s5, 128  ;;  %p4099_p3 = scmp.lt.s32.totalorder %s3036_s5, %s3036_s5 }
  0x66   :  { %2136 = vmatpush1.bf16.msra.mxu0 %v3508_v22  ;;  %2102 = vmatprep.subr.bf16.mxu1 %v3524_v25  ;;  %v119_v12 = vsub.s32 1, %v4205_v11  ;;  %v115_v13 = vsub.s32 0, %v4205_v11  ;;  %v123_v19 = vsub.s32 2, %v4205_v11  ;;  %v127_v20 = vsub.s32 3, %v4205_v11  ;;  %p4095_p2 = scmp.ne.s32.totalorder %s3036_s5, %s4094_s25  ;;  %p4100_p4 = scmp.lt.s32.totalorder %s4094_s25, %s4094_s25 }
  0x67   :  { %2137 = vmatprep.subr.bf16.mxu0 %v3516_v23 }
  0x68   :  { %v120_v16 = vrot.slane %v4209_v14, %v119_v12  ;;  %v116_v17 = vrot.slane %v4209_v14, %v115_v13  ;;  %p4101_p5 = por %p4100_p4, %p4099_p3 }
  0x69   :  { %2103 = vmatpush1.bf16.msra.mxu1 %v3529_v28  ;;  %v128_v28 = vrot.slane %v4209_v14, %v127_v20 }
  0x6a   :  { %2138 = vmatpush1.bf16.msra.mxu0 %v3514_v26  ;;  %2104 = vmatprep.subr.bf16.mxu1 %v3530_v29  ;;  %v124_v26 = vrot.slane %v4209_v14, %v123_v19  ;;  %p4102_p6 = pnand %p4101_p5, %p4095_p2 }
  0x6b   :  { %2139 = vmatprep.subr.bf16.mxu0 %v3522_v27 }
  0x6d   :  { %2105 = vmatpush1.bf16.msra.mxu1 %v3535_v32 }
  0x6e   :  { %2140 = vmatpush1.bf16.msra.mxu0 %v3520_v30  ;;  %2106 = vmatprep.subr.bf16.mxu1 %v3536_v33 }
  0x6f   :  { %2141 = vmatprep.subr.bf16.mxu0 %v3528_v31 }
  0x71   :  { %2107 = vmatpush2.bf16.msra.mxu1 %v3541_v36 }
  0x72   :  { %2142 = vmatpush1.bf16.msra.mxu0 %v3526_v34  ;;  %2108 = vmatprep.subr.bf16.mxu1 %v3542_v38  ;;  %v3587_v38 = vld [vmem:[#allocation7 + $0x750] ss:$24 sps:$4 sm:$0xff]  }
  0x73   :  { %2143 = vmatprep.subr.bf16.mxu0 %v3534_v35 }
  0x75   :  { %2109 = vmatpush2.bf16.msra.mxu1 %v3547_v40 }
  0x76   :  { %2144 = vmatpush1.bf16.msra.mxu0 %v3532_v37  ;;  %2110 = vmatprep.subr.bf16.mxu1 %v3548_v41 }
  0x77   :  { %2145 = vmatprep.subr.bf16.mxu0 %v3540_v39  ;;  %v135_v39 = vsub.s32 5, %v4205_v11 }
  0x79   :  { %2111 = vmatpush2.bf16.msra.mxu1 %v3553_v44 }
  0x7a   :  { %2146 = vmatpush1.bf16.msra.mxu0 %v3538_v42  ;;  %2112 = vmatprep.subr.bf16.mxu1 %v3554_v45  ;;  %v3595_v42 = vld [vmem:[#allocation7 + $0x724] ss:$24 sps:$4 sm:$0xff]  }
  0x7b   :  { %2147 = vmatprep.subr.bf16.mxu0 %v3546_v43 }
  0x7d   :  { %2113 = vmatpush2.bf16.msra.mxu1 %v3559_v48 }
  0x7e   :  { %2148 = vmatpush1.bf16.msra.mxu0 %v3544_v46  ;;  %2114 = vmatprep.subr.bf16.mxu1 %v3560_v49  ;;  %v3593_v49 = vld [vmem:[#allocation7 + $0x720] ss:$24 sps:$4 sm:$0xff]  }
  0x7f   :  { %2149 = vmatprep.subr.bf16.mxu0 %v3552_v47 }
  0x81   :  { %2115 = vmatpush2.bf16.msra.mxu1 %v3565_v52 }
  0x82   :  { %2150 = vmatpush2.bf16.msra.mxu0 %v3550_v50  ;;  %2116 = vmatprep.subr.bf16.mxu1 %v3566_v56  ;;  %v136_v50 = vrot.slane %v4209_v14, %v135_v39 }
  0x83   :  { %2151 = vmatprep.subr.bf16.mxu0 %v3558_v51  ;;  %v3598_v51 = vld [vmem:[#allocation7 + $0x6f4] ss:$24 sps:$4 sm:$0xff]  }
  0x85   :  { %2117 = vmatpush2.bf16.msra.mxu1 %v3571_v59 }
  0x86   :  { %2152 = vmatpush2.bf16.msra.mxu0 %v3556_v53  ;;  %2118 = vmatprep.subr.bf16.mxu1 %v3572_v60  ;;  %v3604_v60 = vld [vmem:[#allocation7 + $0x6c4] ss:$24 sps:$4 sm:$0xff]  }
  0x87   :  { %2153 = vmatprep.subr.bf16.mxu0 %v3564_v54 }
  0x89   :  { %2119 = vmatpush2.bf16.msra.mxu1 %v3577_v63 }
  0x8a   :  { %2154 = vmatpush2.bf16.msra.mxu0 %v3562_v55  ;;  %2120 = vmatprep.subr.bf16.mxu1 %v3578_v0  ;;  %v3602_v0 = vld [vmem:[#allocation7 + $0x6c0] ss:$24 sps:$4 sm:$0xff]  }
  0x8b   :  { %2155 = vmatprep.subr.bf16.mxu0 %v3570_v57  ;;  %v3596_v57 = vld [vmem:[#allocation7 + $0x6f0] ss:$24 sps:$4 sm:$0xff]  }
  0x8d   :  { %2121 = vmatpush2.bf16.msra.mxu1 %v3583_v3 }
  0x8e   :  { %2156 = vmatpush2.bf16.msra.mxu0 %v3568_v58  ;;  %2176 = vmatprep.subr.bf16.mxu1 %v3589_v5  ;;  %v3599_v58 = vld [vmem:[#allocation7 + $0x158] ss:$24 sps:$4 sm:$0xff]   ;;  %v3613_v5 = vld [vmem:[#allocation7 + $0xfc] ss:$24 sps:$4 sm:$0xff]  }
  0x8f   :  { %2157 = vmatprep.subr.bf16.mxu0 %v3576_v61 }
  0x92   :  { %2158 = vmatpush2.bf16.msra.mxu0 %v3574_v62  ;;  %v3607_v62 = vld [vmem:[#allocation7 + $0x12c] ss:$24 sps:$4 sm:$0xff]  }
  0x93   :  { %2159 = vmatprep.subr.bf16.mxu0 %v3582_v1  ;;  %v3605_v1 = vld [vmem:[#allocation7 + $0x128] ss:$24 sps:$4 sm:$0xff]  }
  0x96   :  { %2160 = vmatpush2.bf16.msra.mxu0 %v3580_v2 }
  0x97   :  { %2161 = vmatprep.subr.bf16.mxu0 %v3586_v4  ;;  %v3610_v4 = vld [vmem:[#allocation7 + $0x694] ss:$24 sps:$4 sm:$0xff]  }
  0x9a   :  { %2162 = vmatpush2.bf16.msra.mxu0 %v3584_v6 }
  0x9b   :  { %2163 = vmatprep.subr.bf16.mxu0 %v3592_v7  ;;  %v3608_v7 = vld [vmem:[#allocation7 + $0x690] ss:$24 sps:$4 sm:$0xff]  }
  0x9e   :  { %2164 = vmatpush2.bf16.msra.mxu0 %v3590_v8  ;;  %v3611_v8 = vld [vmem:[#allocation7 + $0xf8] ss:$24 sps:$4 sm:$0xff]  }
  0x9f   :  { %2219 = vmatprep.subr.bf16.mxu0 %v3601_v9 }
 0x111   :  { %v216_v15 = vpop.f32.mrf.mxu0 }
 0x112   :  { %v217_v24 = vadd.f32 %v216_v15, %v116_v17  ;;  %v3616_v15 = vld [vmem:[#allocation7 + $0x664] ss:$24 sps:$4 sm:$0xff]  }
 0x113   :  { %v218_v18 = vpop.f32.mrf.mxu0 }
 0x114   :  { %v219_v22 = vadd.f32 %v218_v18, %v120_v16  ;;  %v311_v33 = vmax.f32 %v217_v24, 0.0  ;;  %v3617_v18 = vld [vmem:[#allocation7 + $0xc8] ss:$24 sps:$4 sm:$0xff]   ;;  %v3623_v24 = vld [vmem:[#allocation7 + $0x98] ss:$24 sps:$4 sm:$0xff]  }
 0x115   :  { %v220_v21 = vpop.f32.mrf.mxu0 }
 0x116   :  { %v221_v23 = vadd.f32 %v220_v21, %v116_v17  ;;  %v312_v31 = vmax.f32 %v219_v22, 0.0  ;;  %v3614_v17 = vld [vmem:[#allocation7 + $0x660] ss:$24 sps:$4 sm:$0xff]   ;;  %v3622_v21 = vld [vmem:[#allocation7 + $0x634] ss:$24 sps:$4 sm:$0xff]  }
 0x117   :  { %v222_v25 = vpop.f32.mrf.mxu0  ;;  %v3625_v22 = vld [vmem:[#allocation7 + $0x9c] ss:$24 sps:$4 sm:$0xff]  }
 0x118   :  { %v223_v27 = vadd.f32 %v222_v25, %v120_v16  ;;  %v317_v29 = vmax.f32 %v221_v23, 0.0  ;;  %v3619_v16 = vld [vmem:[#allocation7 + $0xcc] ss:$24 sps:$4 sm:$0xff]   ;;  %v3620_v23 = vld [vmem:[#allocation7 + $0x630] ss:$24 sps:$4 sm:$0xff]  }
 0x119   :  { %v259_v30 = vpop.f32.mrf.mxu0  ;;  %v3628_v25 = vld [vmem:[#allocation7 + $0x604] ss:$24 sps:$4 sm:$0xff]  }
 0x11a   :  { %v318_v32 = vmax.f32 %v223_v27, 0.0  ;;  %v260_v34 = vadd.f32 %v259_v30, %v124_v26  ;;  %v4228_v40 = vpack.c.bf16 %v317_v29, %v311_v33  ;;  %v3626_v27 = vld [vmem:[#allocation7 + $0x600] ss:$24 sps:$4 sm:$0xff]   ;;  %v3634_v29 = vld [vmem:[#allocation7 + $0x8d4] ss:$24 sps:$4 sm:$0xff]  }
 0x11b   :  { %v261_v35 = vpop.f32.mrf.mxu0  ;;  %v3637_v30 = vld [vmem:[#allocation7 + $0x3c] ss:$24 sps:$4 sm:$0xff]  }
 0x11c   :  { %v4225_v36 = vpack.c.bf16 %v318_v32, %v312_v31  ;;  %v262_v37 = vadd.f32 %v261_v35, %v128_v28  ;;  %v313_v44 = vmax.f32 %v260_v34, 0.0  ;;  %v3632_v31 = vld [vmem:[#allocation7 + $0x8d0] ss:$24 sps:$4 sm:$0xff]   ;;  %v3640_v33 = vld [vmem:[#allocation7 + $0x8a4] ss:$24 sps:$4 sm:$0xff]  }
 0x11d   :  { %v263_v41 = vpop.f32.mrf.mxu0  ;;  %v3635_v32 = vld [vmem:[#allocation7 + $0x38] ss:$24 sps:$4 sm:$0xff]   ;;  %v3643_v34 = vld [vmem:[#allocation7 + $0xc] ss:$24 sps:$4 sm:$0xff]  }
 0x11e   :  { %v264_v43 = vadd.f32 %v263_v41, %v124_v26  ;;  %2122 = vmatprep.mubr.bf16.mxu1 %v4225_v36  ;;  %v314_v46 = vmax.f32 %v262_v37, 0.0  ;;  %v3631_v26 = vld [vmem:[#allocation7 + $0x6c] ss:$24 sps:$4 sm:$0xff]   ;;  %v3638_v35 = vld [vmem:[#allocation7 + $0x8a0] ss:$24 sps:$4 sm:$0xff]  }
 0x11f   :  { %v265_v45 = vpop.f32.mrf.mxu0  ;;  %2123 = vmatmul.mubr.bf16.vlgmr.msra.gmra.mxu1 %v4228_v40  ;;  %v3641_v37 = vld [vmem:[#allocation7 + $0x8] ss:$24 sps:$4 sm:$0xff]   ;;  %v3649_v41 = vld [vmem:[#allocation7 + $0x2dc] ss:$24 sps:$4 sm:$0xff]  }
 0x120   :  { %v319_v47 = vmax.f32 %v264_v43, 0.0  ;;  %v266_v48 = vadd.f32 %v265_v45, %v128_v28  ;;  %2177 = vmatpush1.bf16.msra.mxu1 %v3587_v38  ;;  %v3629_v28 = vld [vmem:[#allocation7 + $0x68] ss:$24 sps:$4 sm:$0xff]   ;;  %v3646_v38 = vld [vmem:[#allocation7 + $0x874] ss:$24 sps:$4 sm:$0xff]  }
 0x121   :  { %2178 = vmatprep.subr.bf16.mxu1 %v3595_v42  ;;  %v4235_v52 = vpop.f32.mrf.mxu0  ;;  %v3644_v42 = vld [vmem:[#allocation7 + $0x870] ss:$24 sps:$4 sm:$0xff]   ;;  %v3655_v45 = vld [vmem:[#allocation7 + $0x2ac] ss:$24 sps:$4 sm:$0xff]  }
 0x122   :  { %v320_v53 = vmax.f32 %v266_v48, 0.0  ;;  %v4237_v54 = vpack.c.bf16 %v319_v47, %v313_v44  ;;  %v3647_v43 = vld [vmem:[#allocation7 + $0x2d8] ss:$24 sps:$4 sm:$0xff]   ;;  %v3652_v44 = vld [vmem:[#allocation7 + $0x844] ss:$24 sps:$4 sm:$0xff]  }
 0x123   :  { %v304_v55 = vpop.f32.mrf.mxu0  ;;  %v3653_v47 = vld [vmem:[#allocation7 + $0x2a8] ss:$24 sps:$4 sm:$0xff]   ;;  %v3658_v48 = vld [vmem:[#allocation7 + $0x814] ss:$24 sps:$4 sm:$0xff]  }
 0x124   :  { %v4239_v56 = vpack.c.bf16 %v320_v53, %v314_v46  ;;  %2179 = vmatpush1.bf16.msra.mxu1 %v3593_v49  ;;  %v305_v59 = vadd.f32 %v304_v55, %v136_v50  ;;  %v3650_v46 = vld [vmem:[#allocation7 + $0x840] ss:$24 sps:$4 sm:$0xff]   ;;  %v3661_v49 = vld [vmem:[#allocation7 + $0x27c] ss:$24 sps:$4 sm:$0xff]   ;;  %v131_v53 = vsub.s32 4, %v4205_v11 }
 0x125   :  { %2180 = vmatprep.subr.bf16.mxu1 %v3598_v51  ;;  %v4241_v61 = vpop.f32.mrf.mxu0  ;;  %v3659_v51 = vld [vmem:[#allocation7 + $0x278] ss:$24 sps:$4 sm:$0xff]   ;;  %v3664_v55 = vld [vmem:[#allocation7 + $0x7e4] ss:$24 sps:$4 sm:$0xff]  }
 0x126   :  { %2165 = vmatprep.mubr.bf16.mxu0 %v4239_v56  ;;  %v316_v2 = vmax.f32 %v305_v59, 0.0  ;;  %v3665_v59 = vld [vmem:[#allocation7 + $0x248] ss:$24 sps:$4 sm:$0xff]  }
 0x127   :  { %2166 = vmatmul.mubr.bf16.vlgmr.msra.gmra.mxu0 %v4237_v54  ;;  %v308_v63 = vpop.f32.mrf.mxu0 }
 0x128   :  { %2181 = vmatpush1.bf16.msra.mxu1 %v3596_v57  ;;  %2220 = vmatpush1.bf16.msra.mxu0 %v3599_v58  ;;  %v309_v3 = vadd.f32 %v308_v63, %v136_v50  ;;  %v3656_v50 = vld [vmem:[#allocation7 + $0x810] ss:$24 sps:$4 sm:$0xff]   ;;  %v3667_v57 = vld [vmem:[#allocation7 + $0x24c] ss:$24 sps:$4 sm:$0xff]   ;;  %v3662_v58 = vld [vmem:[#allocation7 + $0x7e0] ss:$24 sps:$4 sm:$0xff]  }
 0x129   :  { %2251 = vmatprep.mubr.bf16.mxu0 %v4225_v36  ;;  %2182 = vmatprep.subr.bf16.mxu1 %v3604_v60  ;;  %v132_v60 = vrot.slane %v4209_v14, %v131_v53  ;;  %v3673_v63 = vld [vmem:[#allocation7 + $0x21c] ss:$24 sps:$4 sm:$0xff]   ;;  %v3677_v14 = vld [vmem:[#allocation7 + $0x1e8] ss:$24 sps:$4 sm:$0xff]  }
 0x12a   :  { %2221 = vmatprep.subr.bf16.mxu0 %v3607_v62  ;;  %v322_v6 = vmax.f32 %v309_v3, 0.0  ;;  %v3670_v62 = vld [vmem:[#allocation7 + $0x7b4] ss:$24 sps:$4 sm:$0xff]  }
 0x12b   :  { %v307_v3 = vadd.f32 %v4241_v61, %v132_v60  ;;  %v3688_v61 = vld [vmem:[#allocation7 + $0x18c] ss:$24 sps:$4 sm:$0xff]  }
 0x12c   :  { %2183 = vmatpush1.bf16.msra.mxu1 %v3602_v0  ;;  %2222 = vmatpush1.bf16.msra.mxu0 %v3605_v1  ;;  %v4246_v9 = vpack.c.bf16 %v322_v6, %v316_v2  ;;  %v3668_v0 = vld [vmem:[#allocation7 + $0x7b0] ss:$24 sps:$4 sm:$0xff]   ;;  %v303_v2 = vadd.f32 %v4235_v52, %v132_v60  ;;  %v3674_v6 = vld [vmem:[#allocation7 + $0x780] ss:$24 sps:$4 sm:$0xff]   ;;  %v3739_v60 = vld [vmem:[#allocation7 + $0x60c] ss:$24 sps:$4 sm:$0xff]  }
 0x12d   :  { %2184 = vmatprep.subr.bf16.mxu1 %v3610_v4  ;;  %2223 = vmatprep.subr.bf16.mxu0 %v3613_v5  ;;  %v3671_v1 = vld [vmem:[#allocation7 + $0x218] ss:$24 sps:$4 sm:$0xff]   ;;  %v3676_v4 = vld [vmem:[#allocation7 + $0x784] ss:$24 sps:$4 sm:$0xff]  }
 0x12e   :  { %2208 = vmatprep.mubr.bf16.mxu1 %v4246_v9  ;;  %v3679_v5 = vld [vmem:[#allocation7 + $0x1ec] ss:$24 sps:$4 sm:$0xff]   ;;  %v3683_v52 = vld [vmem:[#allocation7 + $0x458] ss:$24 sps:$4 sm:$0xff]  }
 0x130   :  { %2185 = vmatpush1.bf16.msra.mxu1 %v3608_v7  ;;  %2224 = vmatpush1.bf16.msra.mxu0 %v3611_v8  ;;  %v315_v7 = vmax.f32 %v303_v2, 0.0  ;;  %v321_v8 = vmax.f32 %v307_v3, 0.0  ;;  %v3740_v2 = vld [vmem:[#allocation7 + $0x578] ss:$24 sps:$4 sm:$0xff]  }
 0x131   :  { %2186 = vmatprep.subr.bf16.mxu1 %v3616_v15  ;;  %2225 = vmatprep.subr.bf16.mxu0 %v3619_v16  ;;  %v3682_v15 = vld [vmem:[#allocation7 + $0x1bc] ss:$24 sps:$4 sm:$0xff]   ;;  %v3743_v3 = vld [vmem:[#allocation7 + $0x8d8] ss:$24 sps:$4 sm:$0xff]  }
 0x132   :  { %v3685_v16 = vld [vmem:[#allocation7 + $0x45c] ss:$24 sps:$4 sm:$0xff]  }
 0x134   :  { %2187 = vmatpush1.bf16.msra.mxu1 %v3614_v17  ;;  %2226 = vmatpush1.bf16.msra.mxu0 %v3617_v18  ;;  %v3680_v17 = vld [vmem:[#allocation7 + $0x1b8] ss:$24 sps:$4 sm:$0xff]   ;;  %v4255_v18 = vpack.c.bf16 %v321_v8, %v315_v7  ;;  %v3754_v7 = vld [vmem:[#allocation7 + $0x51c] ss:$24 sps:$4 sm:$0xff]  }
 0x135   :  { %2188 = vmatprep.subr.bf16.mxu1 %v3622_v21  ;;  %2227 = vmatprep.subr.bf16.mxu0 %v3625_v22  ;;  %v3691_v21 = vld [vmem:[#allocation7 + $0x42c] ss:$24 sps:$4 sm:$0xff]   ;;  %v3686_v22 = vld [vmem:[#allocation7 + $0x188] ss:$24 sps:$4 sm:$0xff]   ;;  %v3757_v8 = vld [vmem:[#allocation7 + $0x87c] ss:$24 sps:$4 sm:$0xff]  }
 0x138   :  { %2189 = vmatpush1.bf16.msra.mxu1 %v3620_v23  ;;  %2228 = vmatpush1.bf16.msra.mxu0 %v3623_v24  ;;  %v3689_v23 = vld [vmem:[#allocation7 + $0x428] ss:$24 sps:$4 sm:$0xff]   ;;  %v3694_v24 = vld [vmem:[#allocation7 + $0x3fc] ss:$24 sps:$4 sm:$0xff]  }
 0x139   :  { %2190 = vmatprep.subr.bf16.mxu1 %v3628_v25  ;;  %2229 = vmatprep.subr.bf16.mxu0 %v3631_v26  ;;  %v3697_v25 = vld [vmem:[#allocation7 + $0x75c] ss:$24 sps:$4 sm:$0xff]   ;;  %v3692_v26 = vld [vmem:[#allocation7 + $0x3f8] ss:$24 sps:$4 sm:$0xff]  }
 0x13c   :  { %2191 = vmatpush1.bf16.msra.mxu1 %v3626_v27  ;;  %2230 = vmatpush1.bf16.msra.mxu0 %v3629_v28  ;;  %v3695_v27 = vld [vmem:[#allocation7 + $0x758] ss:$24 sps:$4 sm:$0xff]   ;;  %v3700_v28 = vld [vmem:[#allocation7 + $0x3cc] ss:$24 sps:$4 sm:$0xff]  }
 0x13d   :  { %2192 = vmatprep.subr.bf16.mxu1 %v3634_v29  ;;  %2231 = vmatprep.subr.bf16.mxu0 %v3637_v30  ;;  %v3703_v29 = vld [vmem:[#allocation7 + $0x72c] ss:$24 sps:$4 sm:$0xff]   ;;  %v3698_v30 = vld [vmem:[#allocation7 + $0x3c8] ss:$24 sps:$4 sm:$0xff]  }
 0x140   :  { %2193 = vmatpush2.bf16.msra.mxu1 %v3632_v31  ;;  %2232 = vmatpush1.bf16.msra.mxu0 %v3635_v32  ;;  %v3701_v31 = vld [vmem:[#allocation7 + $0x728] ss:$24 sps:$4 sm:$0xff]   ;;  %v3706_v32 = vld [vmem:[#allocation7 + $0x39c] ss:$24 sps:$4 sm:$0xff]  }
 0x141   :  { %2194 = vmatprep.subr.bf16.mxu1 %v3640_v33  ;;  %2233 = vmatprep.subr.bf16.mxu0 %v3643_v34  ;;  %v3709_v33 = vld [vmem:[#allocation7 + $0x6fc] ss:$24 sps:$4 sm:$0xff]   ;;  %v3704_v34 = vld [vmem:[#allocation7 + $0x398] ss:$24 sps:$4 sm:$0xff]  }
 0x144   :  { %2195 = vmatpush2.bf16.msra.mxu1 %v3638_v35  ;;  %2234 = vmatpush1.bf16.msra.mxu0 %v3641_v37  ;;  %v3707_v35 = vld [vmem:[#allocation7 + $0x6f8] ss:$24 sps:$4 sm:$0xff]   ;;  %v3712_v37 = vld [vmem:[#allocation7 + $0x36c] ss:$24 sps:$4 sm:$0xff]  }
 0x145   :  { %2196 = vmatprep.subr.bf16.mxu1 %v3646_v38  ;;  %2235 = vmatprep.subr.bf16.mxu0 %v3649_v41  ;;  %v3715_v38 = vld [vmem:[#allocation7 + $0x6cc] ss:$24 sps:$4 sm:$0xff]   ;;  %v3710_v41 = vld [vmem:[#allocation7 + $0x368] ss:$24 sps:$4 sm:$0xff]  }
 0x148   :  { %2197 = vmatpush2.bf16.msra.mxu1 %v3644_v42  ;;  %2236 = vmatpush2.bf16.msra.mxu0 %v3647_v43  ;;  %v3713_v42 = vld [vmem:[#allocation7 + $0x6c8] ss:$24 sps:$4 sm:$0xff]   ;;  %v3718_v43 = vld [vmem:[#allocation7 + $0x33c] ss:$24 sps:$4 sm:$0xff]  }
 0x149   :  { %2198 = vmatprep.subr.bf16.mxu1 %v3652_v44  ;;  %2237 = vmatprep.subr.bf16.mxu0 %v3655_v45  ;;  %v3721_v44 = vld [vmem:[#allocation7 + $0x69c] ss:$24 sps:$4 sm:$0xff]   ;;  %v3716_v45 = vld [vmem:[#allocation7 + $0x338] ss:$24 sps:$4 sm:$0xff]  }
 0x14c   :  { %2199 = vmatpush2.bf16.msra.mxu1 %v3650_v46  ;;  %2238 = vmatpush2.bf16.msra.mxu0 %v3653_v47  ;;  %v3719_v46 = vld [vmem:[#allocation7 + $0x698] ss:$24 sps:$4 sm:$0xff]   ;;  %v3724_v47 = vld [vmem:[#allocation7 + $0x30c] ss:$24 sps:$4 sm:$0xff]  }
 0x14d   :  { %2200 = vmatprep.subr.bf16.mxu1 %v3658_v48  ;;  %2239 = vmatprep.subr.bf16.mxu0 %v3661_v49  ;;  %v3727_v48 = vld [vmem:[#allocation7 + $0x66c] ss:$24 sps:$4 sm:$0xff]   ;;  %v3722_v49 = vld [vmem:[#allocation7 + $0x308] ss:$24 sps:$4 sm:$0xff]  }
 0x150   :  { %2201 = vmatpush2.bf16.msra.mxu1 %v3656_v50  ;;  %2240 = vmatpush2.bf16.msra.mxu0 %v3659_v51  ;;  %v3725_v50 = vld [vmem:[#allocation7 + $0x668] ss:$24 sps:$4 sm:$0xff]   ;;  %v3730_v51 = vld [vmem:[#allocation7 + $0x5dc] ss:$24 sps:$4 sm:$0xff]  }
 0x151   :  { %2202 = vmatprep.subr.bf16.mxu1 %v3664_v55  ;;  %2241 = vmatprep.subr.bf16.mxu0 %v3667_v57  ;;  %v3733_v55 = vld [vmem:[#allocation7 + $0x63c] ss:$24 sps:$4 sm:$0xff]   ;;  %v3728_v57 = vld [vmem:[#allocation7 + $0x5d8] ss:$24 sps:$4 sm:$0xff]  }
 0x154   :  { %2203 = vmatpush2.bf16.msra.mxu1 %v3662_v58  ;;  %2242 = vmatpush2.bf16.msra.mxu0 %v3665_v59  ;;  %v3731_v58 = vld [vmem:[#allocation7 + $0x638] ss:$24 sps:$4 sm:$0xff]   ;;  %v3736_v59 = vld [vmem:[#allocation7 + $0x5ac] ss:$24 sps:$4 sm:$0xff]  }
 0x155   :  { %2204 = vmatprep.subr.bf16.mxu1 %v3670_v62  ;;  %2243 = vmatprep.subr.bf16.mxu0 %v3673_v63  ;;  %v3734_v62 = vld [vmem:[#allocation7 + $0x5a8] ss:$24 sps:$4 sm:$0xff]  }
 0x156   :  { %v3737_v63 = vld [vmem:[#allocation7 + $0x608] ss:$24 sps:$4 sm:$0xff]  }
 0x158   :  { %2205 = vmatpush2.bf16.msra.mxu1 %v3668_v0  ;;  %2244 = vmatpush2.bf16.msra.mxu0 %v3671_v1  ;;  %v3742_v0 = vld [vmem:[#allocation7 + $0x57c] ss:$24 sps:$4 sm:$0xff]  }
 0x159   :  { %2206 = vmatprep.subr.bf16.mxu1 %v3676_v4  ;;  %2245 = vmatprep.subr.bf16.mxu0 %v3679_v5  ;;  %v3745_v1 = vld [vmem:[#allocation7 + $0x8dc] ss:$24 sps:$4 sm:$0xff]   ;;  %v3748_v4 = vld [vmem:[#allocation7 + $0x54c] ss:$24 sps:$4 sm:$0xff]  }
 0x15a   :  { %v3751_v5 = vld [vmem:[#allocation7 + $0x8ac] ss:$24 sps:$4 sm:$0xff]  }
 0x15c   :  { %2207 = vmatpush2.bf16.msra.mxu1 %v3674_v6  ;;  %2246 = vmatpush2.bf16.msra.mxu0 %v3677_v14  ;;  %v3746_v6 = vld [vmem:[#allocation7 + $0x548] ss:$24 sps:$4 sm:$0xff]  }
 0x15d   :  { %2247 = vmatprep.subr.bf16.mxu0 %v3682_v15  ;;  %2262 = vmatprep.subr.bf16.mxu1 %v3685_v16  ;;  %v3749_v14 = vld [vmem:[#allocation7 + $0x8a8] ss:$24 sps:$4 sm:$0xff]   ;;  %v3752_v15 = vld [vmem:[#allocation7 + $0x518] ss:$24 sps:$4 sm:$0xff]  }
 0x15e   :  { %v3755_v16 = vld [vmem:[#allocation7 + $0x878] ss:$24 sps:$4 sm:$0xff]  }
 0x15f   :  { %2209 = vmatmul.mubr.bf16.vlgmr.msra.gmra.mxu1 %v4255_v18 }
 0x160   :  { %2248 = vmatpush2.bf16.msra.mxu0 %v3680_v17  ;;  %2263 = vmatpush1.bf16.msra.mxu1 %v3683_v52  ;;  %v3760_v17 = vld [vmem:[#allocation7 + $0x4ec] ss:$24 sps:$4 sm:$0xff]  }
 0x161   :  { %2294 = vmatprep.mubr.bf16.mxu1 %v4239_v56  ;;  %2249 = vmatprep.subr.bf16.mxu0 %v3688_v61  ;;  %v3763_v52 = vld [vmem:[#allocation7 + $0x84c] ss:$24 sps:$4 sm:$0xff]   ;;  %v3758_v61 = vld [vmem:[#allocation7 + $0x4e8] ss:$24 sps:$4 sm:$0xff]  }
 0x162   :  { %2264 = vmatprep.subr.bf16.mxu1 %v3691_v21  ;;  %v3761_v21 = vld [vmem:[#allocation7 + $0x848] ss:$24 sps:$4 sm:$0xff]  }
 0x164   :  { %2250 = vmatpush2.bf16.msra.mxu0 %v3686_v22  ;;  %2265 = vmatpush1.bf16.msra.mxu1 %v3689_v23  ;;  %v3766_v22 = vld [vmem:[#allocation7 + $0x4bc] ss:$24 sps:$4 sm:$0xff]  }
 0x165   :  { %2266 = vmatprep.subr.bf16.mxu1 %v3694_v24  ;;  %2305 = vmatprep.subr.bf16.mxu0 %v3697_v25  ;;  %v3769_v23 = vld [vmem:[#allocation7 + $0x81c] ss:$24 sps:$4 sm:$0xff]   ;;  %v3764_v24 = vld [vmem:[#allocation7 + $0x4b8] ss:$24 sps:$4 sm:$0xff]  }
 0x166   :  { %v3767_v25 = vld [vmem:[#allocation7 + $0x818] ss:$24 sps:$4 sm:$0xff]  }
 0x167   :  { %2252 = vmatmul.mubr.bf16.vlgmr.msra.gmra.mxu0 %v4228_v40 }
 0x168   :  { %2267 = vmatpush1.bf16.msra.mxu1 %v3692_v26  ;;  %2306 = vmatpush1.bf16.msra.mxu0 %v3695_v27  ;;  %v3772_v26 = vld [vmem:[#allocation7 + $0x48c] ss:$24 sps:$4 sm:$0xff]  }
 0x169   :  { %2337 = vmatprep.mubr.bf16.mxu0 %v4246_v9  ;;  %2268 = vmatprep.subr.bf16.mxu1 %v3700_v28  ;;  %v3775_v27 = vld [vmem:[#allocation7 + $0x7ec] ss:$24 sps:$4 sm:$0xff]   ;;  %v3770_v28 = vld [vmem:[#allocation7 + $0x488] ss:$24 sps:$4 sm:$0xff]  }
 0x16a   :  { %2307 = vmatprep.subr.bf16.mxu0 %v3703_v29  ;;  %v3773_v29 = vld [vmem:[#allocation7 + $0x7e8] ss:$24 sps:$4 sm:$0xff]  }
 0x16c   :  { %2269 = vmatpush1.bf16.msra.mxu1 %v3698_v30  ;;  %2308 = vmatpush1.bf16.msra.mxu0 %v3701_v31  ;;  %v3778_v30 = vld [vmem:[#allocation7 + $0x7bc] ss:$24 sps:$4 sm:$0xff]  }
 0x16d   :  { %2270 = vmatprep.subr.bf16.mxu1 %v3706_v32  ;;  %2309 = vmatprep.subr.bf16.mxu0 %v3709_v33  ;;  %v3781_v31 = vld [vmem:[#allocation7 + $0x164] ss:$24 sps:$4 sm:$0xff]   ;;  %v3776_v32 = vld [vmem:[#allocation7 + $0x7b8] ss:$24 sps:$4 sm:$0xff]  }
 0x16e   :  { %v3779_v33 = vld [vmem:[#allocation7 + $0x160] ss:$24 sps:$4 sm:$0xff]  }
 0x170   :  { %2271 = vmatpush1.bf16.msra.mxu1 %v3704_v34  ;;  %2310 = vmatpush1.bf16.msra.mxu0 %v3707_v35  ;;  %v3784_v34 = vld [vmem:[#allocation7 + $0x78c] ss:$24 sps:$4 sm:$0xff]  }
 0x171   :  { %2272 = vmatprep.subr.bf16.mxu1 %v3712_v37  ;;  %2311 = vmatprep.subr.bf16.mxu0 %v3715_v38  ;;  %v3787_v35 = vld [vmem:[#allocation7 + $0x134] ss:$24 sps:$4 sm:$0xff]   ;;  %v3782_v37 = vld [vmem:[#allocation7 + $0x788] ss:$24 sps:$4 sm:$0xff]  }
 0x172   :  { %v3785_v38 = vld [vmem:[#allocation7 + $0x130] ss:$24 sps:$4 sm:$0xff]  }
 0x174   :  { %2273 = vmatpush1.bf16.msra.mxu1 %v3710_v41  ;;  %2312 = vmatpush1.bf16.msra.mxu0 %v3713_v42  ;;  %v3790_v41 = vld [vmem:[#allocation7 + $0x104] ss:$24 sps:$4 sm:$0xff]  }
 0x175   :  { %2274 = vmatprep.subr.bf16.mxu1 %v3718_v43  ;;  %2313 = vmatprep.subr.bf16.mxu0 %v3721_v44  ;;  %v3793_v42 = vld [vmem:[#allocation7 + $0x464] ss:$24 sps:$4 sm:$0xff]   ;;  %v3788_v43 = vld [vmem:[#allocation7 + $0x100] ss:$24 sps:$4 sm:$0xff]  }
 0x176   :  { %v3791_v44 = vld [vmem:[#allocation7 + $0x460] ss:$24 sps:$4 sm:$0xff]  }
 0x178   :  { %2275 = vmatpush1.bf16.msra.mxu1 %v3716_v45  ;;  %2314 = vmatpush1.bf16.msra.mxu0 %v3719_v46  ;;  %v3796_v45 = vld [vmem:[#allocation7 + $0xd4] ss:$24 sps:$4 sm:$0xff]  }
 0x179   :  { %2276 = vmatprep.subr.bf16.mxu1 %v3724_v47  ;;  %2315 = vmatprep.subr.bf16.mxu0 %v3727_v48  ;;  %v3799_v46 = vld [vmem:[#allocation7 + $0x434] ss:$24 sps:$4 sm:$0xff]   ;;  %v3794_v47 = vld [vmem:[#allocation7 + $0xd0] ss:$24 sps:$4 sm:$0xff]  }
 0x17a   :  { %v3797_v48 = vld [vmem:[#allocation7 + $0x430] ss:$24 sps:$4 sm:$0xff]  }
 0x17c   :  { %2277 = vmatpush1.bf16.msra.mxu1 %v3722_v49  ;;  %2316 = vmatpush1.bf16.msra.mxu0 %v3725_v50  ;;  %v3805_v49 = vld [vmem:[#allocation7 + $0x404] ss:$24 sps:$4 sm:$0xff]   ;;  %v3800_v50 = vld [vmem:[#allocation7 + $0xa0] ss:$24 sps:$4 sm:$0xff]  }
 0x17d   :  { %2278 = vmatprep.subr.bf16.mxu1 %v3730_v51  ;;  %2317 = vmatprep.subr.bf16.mxu0 %v3733_v55  ;;  %v3803_v51 = vld [vmem:[#allocation7 + $0x400] ss:$24 sps:$4 sm:$0xff]   ;;  %v3808_v55 = vld [vmem:[#allocation7 + $0x74] ss:$24 sps:$4 sm:$0xff]  }
 0x180   :  { %2279 = vmatpush2.bf16.msra.mxu1 %v3728_v57  ;;  %2318 = vmatpush1.bf16.msra.mxu0 %v3731_v58  ;;  %v3811_v57 = vld [vmem:[#allocation7 + $0x3d4] ss:$24 sps:$4 sm:$0xff]   ;;  %v3806_v58 = vld [vmem:[#allocation7 + $0x70] ss:$24 sps:$4 sm:$0xff]  }
 0x181   :  { %2280 = vmatprep.subr.bf16.mxu1 %v3736_v59  ;;  %2319 = vmatprep.subr.bf16.mxu0 %v3739_v60  ;;  %v3809_v59 = vld [vmem:[#allocation7 + $0x3d0] ss:$24 sps:$4 sm:$0xff]   ;;  %v3814_v60 = vld [vmem:[#allocation7 + $0x44] ss:$24 sps:$4 sm:$0xff]  }
 0x184   :  { %2281 = vmatpush2.bf16.msra.mxu1 %v3734_v62  ;;  %2320 = vmatpush1.bf16.msra.mxu0 %v3737_v63  ;;  %v3812_v62 = vld [vmem:[#allocation7 + $0x40] ss:$24 sps:$4 sm:$0xff]  }
 0x185   :  { %2282 = vmatprep.subr.bf16.mxu1 %v3742_v0  ;;  %2321 = vmatprep.subr.bf16.mxu0 %v3745_v1  ;;  %v3815_v63 = vld [vmem:[#allocation7 + $0x3a0] ss:$24 sps:$4 sm:$0xff]   ;;  %v3820_v0 = vld [vmem:[#allocation7 + $0x14] ss:$24 sps:$4 sm:$0xff]  }
 0x186   :  { %v3823_v1 = vld [vmem:[#allocation7 + $0x374] ss:$24 sps:$4 sm:$0xff]  }
 0x188   :  { %2283 = vmatpush2.bf16.msra.mxu1 %v3740_v2  ;;  %2322 = vmatpush2.bf16.msra.mxu0 %v3743_v3  ;;  %v3818_v2 = vld [vmem:[#allocation7 + $0x10] ss:$24 sps:$4 sm:$0xff]  }
 0x189   :  { %2284 = vmatprep.subr.bf16.mxu1 %v3748_v4  ;;  %2323 = vmatprep.subr.bf16.mxu0 %v3751_v5  ;;  %v3821_v3 = vld [vmem:[#allocation7 + $0x370] ss:$24 sps:$4 sm:$0xff]   ;;  %v3826_v4 = vld [vmem:[#allocation7 + $0x2e4] ss:$24 sps:$4 sm:$0xff]  }
 0x18a   :  { %v3829_v5 = vld [vmem:[#allocation7 + $0x344] ss:$24 sps:$4 sm:$0xff]  }
 0x18c   :  { %2285 = vmatpush2.bf16.msra.mxu1 %v3746_v6  ;;  %2324 = vmatpush2.bf16.msra.mxu0 %v3749_v14  ;;  %v3824_v6 = vld [vmem:[#allocation7 + $0x2e0] ss:$24 sps:$4 sm:$0xff]  }
 0x18d   :  { %2286 = vmatprep.subr.bf16.mxu1 %v3754_v7  ;;  %2325 = vmatprep.subr.bf16.mxu0 %v3757_v8  ;;  %v3827_v14 = vld [vmem:[#allocation7 + $0x340] ss:$24 sps:$4 sm:$0xff]   ;;  %v3832_v7 = vld [vmem:[#allocation7 + $0x2b4] ss:$24 sps:$4 sm:$0xff]  }
 0x18e   :  { %v3835_v8 = vld [vmem:[#allocation7 + $0x314] ss:$24 sps:$4 sm:$0xff]  }
 0x190   :  { %2287 = vmatpush2.bf16.msra.mxu1 %v3752_v15  ;;  %2326 = vmatpush2.bf16.msra.mxu0 %v3755_v16  ;;  %v3830_v15 = vld [vmem:[#allocation7 + $0x2b0] ss:$24 sps:$4 sm:$0xff]  }
 0x191   :  { %2288 = vmatprep.subr.bf16.mxu1 %v3760_v17  ;;  %2327 = vmatprep.subr.bf16.mxu0 %v3763_v52  ;;  %v3833_v16 = vld [vmem:[#allocation7 + $0x310] ss:$24 sps:$4 sm:$0xff]   ;;  %v3838_v17 = vld [vmem:[#allocation7 + $0x284] ss:$24 sps:$4 sm:$0xff]  }
 0x192   :  { %v3841_v52 = vld [vmem:[#allocation7 + $0x5e4] ss:$24 sps:$4 sm:$0xff]  }
 0x194   :  { %2289 = vmatpush2.bf16.msra.mxu1 %v3758_v61  ;;  %2328 = vmatpush2.bf16.msra.mxu0 %v3761_v21  ;;  %v3836_v61 = vld [vmem:[#allocation7 + $0x280] ss:$24 sps:$4 sm:$0xff]  }
 0x195   :  { %2290 = vmatprep.subr.bf16.mxu1 %v3766_v22  ;;  %2329 = vmatprep.subr.bf16.mxu0 %v3769_v23  ;;  %v3839_v21 = vld [vmem:[#allocation7 + $0x5e0] ss:$24 sps:$4 sm:$0xff]   ;;  %v3844_v22 = vld [vmem:[#allocation7 + $0x254] ss:$24 sps:$4 sm:$0xff]  }
 0x196   :  { %v3847_v23 = vld [vmem:[#allocation7 + $0x5b4] ss:$24 sps:$4 sm:$0xff]  }
 0x198   :  { %2291 = vmatpush2.bf16.msra.mxu1 %v3764_v24  ;;  %2330 = vmatpush2.bf16.msra.mxu0 %v3767_v25  ;;  %v3842_v24 = vld [vmem:[#allocation7 + $0x250] ss:$24 sps:$4 sm:$0xff]  }
 0x199   :  { %2292 = vmatprep.subr.bf16.mxu1 %v3772_v26  ;;  %2331 = vmatprep.subr.bf16.mxu0 %v3775_v27  ;;  %v3845_v25 = vld [vmem:[#allocation7 + $0x5b0] ss:$24 sps:$4 sm:$0xff]   ;;  %v3850_v26 = vld [vmem:[#allocation7 + $0x224] ss:$24 sps:$4 sm:$0xff]  }
 0x19a   :  { %v3853_v27 = vld [vmem:[#allocation7 + $0x584] ss:$24 sps:$4 sm:$0xff]  }
 0x19c   :  { %2293 = vmatpush2.bf16.msra.mxu1 %v3770_v28  ;;  %2332 = vmatpush2.bf16.msra.mxu0 %v3773_v29  ;;  %v3848_v28 = vld [vmem:[#allocation7 + $0x220] ss:$24 sps:$4 sm:$0xff]  }
 0x19d   :  { %2333 = vmatprep.subr.bf16.mxu0 %v3778_v30  ;;  %2348 = vmatprep.subr.bf16.mxu1 %v3781_v31  ;;  %v3851_v29 = vld [vmem:[#allocation7 + $0x580] ss:$24 sps:$4 sm:$0xff]   ;;  %v3856_v30 = vld [vmem:[#allocation7 + $0x1f4] ss:$24 sps:$4 sm:$0xff]  }
 0x19e   :  { %v3859_v31 = vld [vmem:[#allocation7 + $0x554] ss:$24 sps:$4 sm:$0xff]  }
 0x19f   :  { %2295 = vmatmul.mubr.bf16.vlgmr.msra.gmra.mxu1 %v4237_v54 }
 0x1a0   :  { %2334 = vmatpush2.bf16.msra.mxu0 %v3776_v32  ;;  %2349 = vmatpush1.bf16.msra.mxu1 %v3779_v33  ;;  %v3854_v32 = vld [vmem:[#allocation7 + $0x1f0] ss:$24 sps:$4 sm:$0xff]  }
 0x1a1   :  { %2380 = vmatprep.mubr.bf16.mxu1 %v4225_v36  ;;  %2335 = vmatprep.subr.bf16.mxu0 %v3784_v34  ;;  %v3802_v36 = vld [vmem:[#allocation7 + $0xa4] ss:$24 sps:$4 sm:$0xff]   ;;  %v3857_v33 = vld [vmem:[#allocation7 + $0x550] ss:$24 sps:$4 sm:$0xff]  }
 0x1a2   :  { %2350 = vmatprep.subr.bf16.mxu1 %v3787_v35  ;;  %v3862_v34 = vld [vmem:[#allocation7 + $0x1c4] ss:$24 sps:$4 sm:$0xff]  }
 0x1a3   :  { %v3865_v35 = vld [vmem:[#allocation7 + $0x524] ss:$24 sps:$4 sm:$0xff]  }
 0x1a4   :  { %2336 = vmatpush2.bf16.msra.mxu0 %v3782_v37  ;;  %2351 = vmatpush1.bf16.msra.mxu1 %v3785_v38  ;;  %v3860_v37 = vld [vmem:[#allocation7 + $0x1c0] ss:$24 sps:$4 sm:$0xff]  }
 0x1a5   :  { %2352 = vmatprep.subr.bf16.mxu1 %v3790_v41  ;;  %2391 = vmatprep.subr.bf16.mxu0 %v3793_v42  ;;  %v3863_v38 = vld [vmem:[#allocation7 + $0x520] ss:$24 sps:$4 sm:$0xff]   ;;  %v3868_v41 = vld [vmem:[#allocation7 + $0x194] ss:$24 sps:$4 sm:$0xff]  }
 0x1a6   :  { %v3871_v42 = vld [vmem:[#allocation7 + $0x4f4] ss:$24 sps:$4 sm:$0xff]  }
 0x1a7   :  { %2338 = vmatmul.mubr.bf16.vlgmr.msra.gmra.mxu0 %v4255_v18 }
 0x1a8   :  { %2353 = vmatpush1.bf16.msra.mxu1 %v3788_v43  ;;  %2392 = vmatpush1.bf16.msra.mxu0 %v3791_v44  ;;  %v3866_v43 = vld [vmem:[#allocation7 + $0x190] ss:$24 sps:$4 sm:$0xff]  }
 0x1a9   :  { %2423 = vmatprep.mubr.bf16.mxu0 %v4239_v56  ;;  %2354 = vmatprep.subr.bf16.mxu1 %v3796_v45  ;;  %v3817_v56 = vld [vmem:[#allocation7 + $0x3a4] ss:$24 sps:$4 sm:$0xff]   ;;  %v3869_v44 = vld [vmem:[#allocation7 + $0x4f0] ss:$24 sps:$4 sm:$0xff]  }
 0x1aa   :  { %2393 = vmatprep.subr.bf16.mxu0 %v3799_v46  ;;  %v3874_v45 = vld [vmem:[#allocation7 + $0x4c4] ss:$24 sps:$4 sm:$0xff]  }
 0x1ab   :  { %v3877_v46 = vld [vmem:[#allocation7 + $0x764] ss:$24 sps:$4 sm:$0xff]  }
 0x1ac   :  { %2355 = vmatpush1.bf16.msra.mxu1 %v3794_v47  ;;  %2394 = vmatpush1.bf16.msra.mxu0 %v3797_v48  ;;  %v3872_v47 = vld [vmem:[#allocation7 + $0x4c0] ss:$24 sps:$4 sm:$0xff]  }
 0x1ad   :  { %2356 = vmatprep.subr.bf16.mxu1 %v3802_v36  ;;  %2395 = vmatprep.subr.bf16.mxu0 %v3805_v49  ;;  %v3875_v48 = vld [vmem:[#allocation7 + $0x760] ss:$24 sps:$4 sm:$0xff]   ;;  %v3880_v36 = vld [vmem:[#allocation7 + $0x494] ss:$24 sps:$4 sm:$0xff]  }
 0x1ae   :  { %v3883_v49 = vld [vmem:[#allocation7 + $0x734] ss:$24 sps:$4 sm:$0xff]  }
 0x1b0   :  { %2357 = vmatpush1.bf16.msra.mxu1 %v3800_v50  ;;  %2396 = vmatpush1.bf16.msra.mxu0 %v3803_v51  ;;  %v3878_v50 = vld [vmem:[#allocation7 + $0x490] ss:$24 sps:$4 sm:$0xff]  }
 0x1b1   :  { %2358 = vmatprep.subr.bf16.mxu1 %v3808_v55  ;;  %2397 = vmatprep.subr.bf16.mxu0 %v3811_v57  ;;  %v3881_v51 = vld [vmem:[#allocation7 + $0x730] ss:$24 sps:$4 sm:$0xff]   ;;  %v3886_v55 = vld [vmem:[#allocation7 + $0x704] ss:$24 sps:$4 sm:$0xff]  }
 0x1b2   :  { %v3914_v57 = vld [vmem:[#allocation8 + $0x78] sm:$0xff]  }
 0x1b4   :  { %2359 = vmatpush1.bf16.msra.mxu1 %v3806_v58  ;;  %2398 = vmatpush1.bf16.msra.mxu0 %v3809_v59  ;;  %v3884_v58 = vld [vmem:[#allocation7 + $0x700] ss:$24 sps:$4 sm:$0xff]  }
 0x1b5   :  { %2360 = vmatprep.subr.bf16.mxu1 %v3814_v60  ;;  %2399 = vmatprep.subr.bf16.mxu0 %v3817_v56  ;;  %v3915_v59 = vld [vmem:[#allocation8 + $0x38] sm:$0xff]   ;;  %v3889_v60 = vld [vmem:[#allocation7 + $0x6d4] ss:$24 sps:$4 sm:$0xff]  }
 0x1b6   :  { %v3919_v56 = vld [vmem:[#allocation8 + $0x70] sm:$0xff]  }
 0x1b8   :  { %2361 = vmatpush1.bf16.msra.mxu1 %v3812_v62  ;;  %2400 = vmatpush1.bf16.msra.mxu0 %v3815_v63  ;;  %v3920_v62 = vld [vmem:[#allocation8 + $0x30] sm:$0xff]   ;;  %v3924_v63 = vld [vmem:[#allocation8 + $0x68] sm:$0xff]  }
 0x1b9   :  { %2362 = vmatprep.subr.bf16.mxu1 %v3820_v0  ;;  %2401 = vmatprep.subr.bf16.mxu0 %v3823_v1  ;;  %v3890_v0 = vld [vmem:[#allocation7 + $0x6a0] ss:$24 sps:$4 sm:$0xff]   ;;  %v3925_v1 = vld [vmem:[#allocation8 + $0x28] sm:$0xff]  }
 0x1bc   :  { %2363 = vmatpush1.bf16.msra.mxu1 %v3818_v2  ;;  %2402 = vmatpush1.bf16.msra.mxu0 %v3821_v3  ;;  %v3895_v2 = vld [vmem:[#allocation7 + $0x674] ss:$24 sps:$4 sm:$0xff]   ;;  %v3929_v3 = vld [vmem:[#allocation8 + $0x60] sm:$0xff]  }
 0x1bd   :  { %2364 = vmatprep.subr.bf16.mxu1 %v3826_v4  ;;  %2403 = vmatprep.subr.bf16.mxu0 %v3829_v5  ;;  %v3893_v4 = vld [vmem:[#allocation7 + $0x670] ss:$24 sps:$4 sm:$0xff]   ;;  %v3898_v5 = vld [vmem:[#allocation7 + $0x644] ss:$24 sps:$4 sm:$0xff]  }
 0x1c0   :  { %2365 = vmatpush2.bf16.msra.mxu1 %v3824_v6  ;;  %2404 = vmatpush1.bf16.msra.mxu0 %v3827_v14  ;;  %v3934_v6 = vld [vmem:[#allocation8 + $0x58] sm:$0xff]  }
 0x1c1   :  { %2366 = vmatprep.subr.bf16.mxu1 %v3832_v7  ;;  %2405 = vmatprep.subr.bf16.mxu0 %v3835_v8  ;;  %v3896_v14 = vld [vmem:[#allocation7 + $0x640] ss:$24 sps:$4 sm:$0xff]   ;;  %v3901_v8 = vld [vmem:[#allocation7 + $0x614] ss:$24 sps:$4 sm:$0xff]  }
 0x1c2   :  { %v3935_v7 = vld [vmem:[#allocation8 + $0x18] sm:$0xff]  }
 0x1c4   :  { %2367 = vmatpush2.bf16.msra.mxu1 %v3830_v15  ;;  %2406 = vmatpush1.bf16.msra.mxu0 %v3833_v16  ;;  %v3936_v15 = vld [vmem:[#allocation8 + $0x50] sm:$0xff]  }
 0x1c5   :  { %2368 = vmatprep.subr.bf16.mxu1 %v3838_v17  ;;  %2407 = vmatprep.subr.bf16.mxu0 %v3841_v52  ;;  %v3899_v16 = vld [vmem:[#allocation7 + $0x610] ss:$24 sps:$4 sm:$0xff]   ;;  %v3904_v52 = vld [vmem:[#allocation7 + $0x8e4] ss:$24 sps:$4 sm:$0xff]  }
 0x1c6   :  { %v3937_v17 = vld [vmem:[#allocation8 + $0x10] sm:$0xff]  }
 0x1c8   :  { %2369 = vmatpush2.bf16.msra.mxu1 %v3836_v61  ;;  %2408 = vmatpush2.bf16.msra.mxu0 %v3839_v21  ;;  %v3938_v61 = vld [vmem:[#allocation8 + $0x48] sm:$0xff]   ;;  %v3902_v21 = vld [vmem:[#allocation7 + $0x8e0] ss:$24 sps:$4 sm:$0xff]  }
 0x1c9   :  { %2370 = vmatprep.subr.bf16.mxu1 %v3844_v22  ;;  %2409 = vmatprep.subr.bf16.mxu0 %v3847_v23  ;;  %v3939_v22 = vld [vmem:[#allocation8 + $0x8] sm:$0xff]  }
 0x1ca   :  { %v3907_v23 = vld [vmem:[#allocation7 + $0x8b4] ss:$24 sps:$4 sm:$0xff]  }
 0x1cc   :  { %2371 = vmatpush2.bf16.msra.mxu1 %v3842_v24  ;;  %2410 = vmatpush2.bf16.msra.mxu0 %v3845_v25  ;;  %v3940_v24 = vld [vmem:[#allocation8 + $0x40] sm:$0xff]   ;;  %v3905_v25 = vld [vmem:[#allocation7 + $0x8b0] ss:$24 sps:$4 sm:$0xff]  }
 0x1cd   :  { %2372 = vmatprep.subr.bf16.mxu1 %v3850_v26  ;;  %2411 = vmatprep.subr.bf16.mxu0 %v3853_v27  ;;  %v3941_v26 = vld [vmem:[#allocation8] sm:$0xff]  }
 0x1ce   :  { %v3910_v27 = vld [vmem:[#allocation7 + $0x884] ss:$24 sps:$4 sm:$0xff]  }
 0x1d0   :  { %2373 = vmatpush2.bf16.msra.mxu1 %v3848_v28  ;;  %2412 = vmatpush2.bf16.msra.mxu0 %v3851_v29  ;;  %v3942_v28 = vld [vmem:[#allocation8 + $0xf8] sm:$0xff]  }
 0x1d1   :  { %2374 = vmatprep.subr.bf16.mxu1 %v3856_v30  ;;  %2413 = vmatprep.subr.bf16.mxu0 %v3859_v31  ;;  %v3908_v29 = vld [vmem:[#allocation7 + $0x880] ss:$24 sps:$4 sm:$0xff]   ;;  %v3913_v30 = vld [vmem:[#allocation7 + $0x854] ss:$24 sps:$4 sm:$0xff]   ;;  %v3911_v31 = vld [vmem:[#allocation7 + $0x850] ss:$24 sps:$4 sm:$0xff]  }
 0x1d4   :  { %2375 = vmatpush2.bf16.msra.mxu1 %v3854_v32  ;;  %2414 = vmatpush2.bf16.msra.mxu0 %v3857_v33  ;;  %v3918_v32 = vld [vmem:[#allocation7 + $0x824] ss:$24 sps:$4 sm:$0xff]   ;;  %v3916_v33 = vld [vmem:[#allocation7 + $0x820] ss:$24 sps:$4 sm:$0xff]  }
 0x1d5   :  { %2376 = vmatprep.subr.bf16.mxu1 %v3862_v34  ;;  %2415 = vmatprep.subr.bf16.mxu0 %v3865_v35  ;;  %v3923_v34 = vld [vmem:[#allocation7 + $0x7f4] ss:$24 sps:$4 sm:$0xff]   ;;  %v3921_v35 = vld [vmem:[#allocation7 + $0x7f0] ss:$24 sps:$4 sm:$0xff]  }
 0x1d8   :  { %2377 = vmatpush2.bf16.msra.mxu1 %v3860_v37  ;;  %2416 = vmatpush2.bf16.msra.mxu0 %v3863_v38  ;;  %v3928_v38 = vld [vmem:[#allocation7 + $0x7c4] ss:$24 sps:$4 sm:$0xff]  }
 0x1d9   :  { %2378 = vmatprep.subr.bf16.mxu1 %v3868_v41  ;;  %2417 = vmatprep.subr.bf16.mxu0 %v3871_v42  ;;  %v3926_v41 = vld [vmem:[#allocation7 + $0x7c0] ss:$24 sps:$4 sm:$0xff]  }
 0x1dc   :  { %2379 = vmatpush2.bf16.msra.mxu1 %v3866_v43  ;;  %2418 = vmatpush2.bf16.msra.mxu0 %v3869_v44  ;;  %v3933_v44 = vld [vmem:[#allocation7 + $0x794] ss:$24 sps:$4 sm:$0xff]  }
 0x1dd   :  { %2419 = vmatprep.subr.bf16.mxu0 %v3874_v45  ;;  %2434 = vmatprep.subr.bf16.mxu1 %v3877_v46  ;;  %v3931_v45 = vld [vmem:[#allocation7 + $0x790] ss:$24 sps:$4 sm:$0xff]  }
 0x1df   :  { %2381 = vmatmul.mubr.bf16.vlgmr.msra.gmra.mxu1 %v4228_v40  ;;  %v3887_v40 = vld [vmem:[#allocation7 + $0x6d0] ss:$24 sps:$4 sm:$0xff]   ;;  %v2124_v37 = vpop.f32.mrf.mxu1 }
 0x1e0   :  { %2420 = vmatpush2.bf16.msra.mxu0 %v3872_v47  ;;  %2435 = vmatpush1.bf16.msra.mxu1 %v3875_v48  ;;  %v4268_v48 = vld [vmem:[#allocation10 + $0x1] ss:$2 sm:$0x3f] }
 0x1e1   :  { %2466 = vmatprep.mubr.bf16.mxu1 %v4246_v9  ;;  %2421 = vmatprep.subr.bf16.mxu0 %v3880_v36  ;;  %v3892_v9 = vld [vmem:[#allocation7 + $0x6a4] ss:$24 sps:$4 sm:$0xff]   ;;  %v2126_v42 = vpop.f32.mrf.mxu1  ;;  %v627_v36 = vrot.slane %v4268_v48, %v119_v12 }
 0x1e2   :  { %2436 = vmatprep.subr.bf16.mxu1 %v3883_v49  ;;  %v623_v49 = vrot.slane %v4268_v48, %v115_v13 }
 0x1e3   :  { %v2128_v46 = vpop.f32.mrf.mxu1 }
 0x1e4   :  { %2422 = vmatpush2.bf16.msra.mxu0 %v3878_v50  ;;  %2437 = vmatpush1.bf16.msra.mxu1 %v3881_v51 }
 0x1e5   :  { %2438 = vmatprep.subr.bf16.mxu1 %v3886_v55  ;;  %3406 = vmatprep.subr.bf16.mxu0 %v3914_v57  ;;  %v2130_v50 = vpop.f32.mrf.mxu1  ;;  %v2127_v57 = vadd.f32 %v2126_v42, %v627_v36  ;;  %v3957_v42 = vld [vmem:[#allocation8 + $0x80] sm:$0xff]  }
 0x1e7   :  { %2424 = vmatmul.mubr.bf16.vlgmr.msra.gmra.mxu0 %v4237_v54  ;;  %v3930_v54 = vld [vmem:[#allocation8 + $0x20] sm:$0xff]   ;;  %v2167_v43 = vpop.f32.mrf.mxu0 }
 0x1e8   :  { %2439 = vmatpush1.bf16.msra.mxu1 %v3884_v58  ;;  %3407 = vmatpush3.bf16.msra.mxu0 %v3915_v59  ;;  %v2129_v58 = vadd.f32 %v2128_v46, %v623_v49  ;;  %v2125_v59 = vadd.f32 %v2124_v37, %v623_v49  ;;  %v3954_v37 = vld [vmem:[#allocation8 + $0xc8] sm:$0xff]   ;;  %v3968_v46 = vld [vmem:[#allocation8 + $0x150] sm:$0xff]  }
 0x1e9   :  { %2440 = vmatprep.subr.bf16.mxu1 %v3889_v60  ;;  %3408 = vmatprep.subr.bf16.mxu0 %v3919_v56  ;;  %v2169_v47 = vpop.f32.mrf.mxu0  ;;  %v3969_v49 = vld [vmem:[#allocation8 + $0x110] sm:$0xff]  }
 0x1eb   :  { %v2171_v51 = vpop.f32.mrf.mxu0 }
 0x1ec   :  { %2441 = vmatpush1.bf16.msra.mxu1 %v3887_v40  ;;  %3409 = vmatpush3.bf16.msra.mxu0 %v3920_v62  ;;  %v2131_v40 = vadd.f32 %v2130_v50, %v627_v36  ;;  %v2170_v62 = vadd.f32 %v2169_v47, %v2127_v57  ;;  %v635_v50 = vrot.slane %v4268_v48, %v127_v20 }
 0x1ed   :  { %2442 = vmatprep.subr.bf16.mxu1 %v3892_v9  ;;  %3410 = vmatprep.subr.bf16.mxu0 %v3924_v63  ;;  %v2173_v60 = vpop.f32.mrf.mxu0  ;;  %v2172_v9 = vadd.f32 %v2171_v51, %v2129_v58  ;;  %v2168_v63 = vadd.f32 %v2167_v43, %v2125_v59  ;;  %v3970_v51 = vld [vmem:[#allocation8 + $0x148] sm:$0xff]  }
 0x1ee   :  { %v3971_v59 = vld [vmem:[#allocation8 + $0x108] sm:$0xff]  }
 0x1f0   :  { %2443 = vmatpush1.bf16.msra.mxu1 %v3890_v0  ;;  %3411 = vmatpush3.bf16.msra.mxu0 %v3925_v1  ;;  %v2174_v0 = vadd.f32 %v2173_v60, %v2131_v40 }
 0x1f1   :  { %2444 = vmatprep.subr.bf16.mxu1 %v3895_v2  ;;  %3412 = vmatprep.subr.bf16.mxu0 %v3929_v3 }
 0x1f4   :  { %2445 = vmatpush1.bf16.msra.mxu1 %v3893_v4  ;;  %3413 = vmatpush3.bf16.msra.mxu0 %v3930_v54 }
 0x1f5   :  { %2446 = vmatprep.subr.bf16.mxu1 %v3898_v5  ;;  %3414 = vmatprep.subr.bf16.mxu0 %v3934_v6 }
 0x1f8   :  { %2447 = vmatpush1.bf16.msra.mxu1 %v3896_v14  ;;  %3415 = vmatpush3.bf16.msra.mxu0 %v3935_v7  ;;  %v3943_v7 = vld [vmem:[#allocation8 + $0xb8] sm:$0xff]  }
 0x1f9   :  { %2448 = vmatprep.subr.bf16.mxu1 %v3901_v8  ;;  %3416 = vmatprep.subr.bf16.mxu0 %v3936_v15  ;;  %v3944_v15 = vld [vmem:[#allocation8 + $0xf0] sm:$0xff]  }
 0x1fc   :  { %2449 = vmatpush1.bf16.msra.mxu1 %v3899_v16  ;;  %3417 = vmatpush3.bf16.msra.mxu0 %v3937_v17  ;;  %v3945_v16 = vld [vmem:[#allocation8 + $0xb0] sm:$0xff]   ;;  %v3958_v17 = vld [vmem:[#allocation8 + $0x178] sm:$0xff]  }
 0x1fd   :  { %2450 = vmatprep.subr.bf16.mxu1 %v3904_v52  ;;  %3418 = vmatprep.subr.bf16.mxu0 %v3938_v61  ;;  %v3959_v52 = vld [vmem:[#allocation8 + $0x138] sm:$0xff]   ;;  %v3960_v61 = vld [vmem:[#allocation8 + $0x170] sm:$0xff]  }
 0x200   :  { %2451 = vmatpush2.bf16.msra.mxu1 %v3902_v21  ;;  %3419 = vmatpush3.bf16.msra.mxu0 %v3939_v22  ;;  %v3946_v21 = vld [vmem:[#allocation8 + $0xe8] sm:$0xff]   ;;  %v3961_v22 = vld [vmem:[#allocation8 + $0x130] sm:$0xff]  }
 0x201   :  { %2452 = vmatprep.subr.bf16.mxu1 %v3907_v23  ;;  %3420 = vmatprep.subr.bf16.mxu0 %v3940_v24  ;;  %v3947_v23 = vld [vmem:[#allocation8 + $0xa8] sm:$0xff]  }
 0x202   :  { %v3962_v24 = vld [vmem:[#allocation8 + $0x168] sm:$0xff]  }
 0x204   :  { %2453 = vmatpush2.bf16.msra.mxu1 %v3905_v25  ;;  %3421 = vmatpush3.bf16.msra.mxu0 %v3941_v26  ;;  %v3948_v25 = vld [vmem:[#allocation8 + $0xe0] sm:$0xff]   ;;  %v3963_v26 = vld [vmem:[#allocation8 + $0x128] sm:$0xff]  }
 0x205   :  { %2454 = vmatprep.subr.bf16.mxu1 %v3910_v27  ;;  %3428 = vmatprep.subr.bf16.mxu0 %v3942_v28  ;;  %v3949_v27 = vld [vmem:[#allocation8 + $0xa0] sm:$0xff]  }
 0x206   :  { %v3964_v28 = vld [vmem:[#allocation8 + $0x160] sm:$0xff]  }
 0x208   :  { %2455 = vmatpush2.bf16.msra.mxu1 %v3908_v29  ;;  %v3950_v29 = vld [vmem:[#allocation8 + $0xd8] sm:$0xff]  }
 0x209   :  { %2456 = vmatprep.subr.bf16.mxu1 %v3913_v30  ;;  %v3965_v30 = vld [vmem:[#allocation8 + $0x120] sm:$0xff]  }
 0x20c   :  { %2457 = vmatpush2.bf16.msra.mxu1 %v3911_v31  ;;  %v3951_v31 = vld [vmem:[#allocation8 + $0x98] sm:$0xff]  }
 0x20d   :  { %2458 = vmatprep.subr.bf16.mxu1 %v3918_v32  ;;  %v3966_v32 = vld [vmem:[#allocation8 + $0x158] sm:$0xff]  }
 0x210   :  { %2459 = vmatpush2.bf16.msra.mxu1 %v3916_v33  ;;  %v3952_v33 = vld [vmem:[#allocation8 + $0xd0] sm:$0xff]  }
 0x211   :  { %2460 = vmatprep.subr.bf16.mxu1 %v3923_v34  ;;  %v3967_v34 = vld [vmem:[#allocation8 + $0x118] sm:$0xff]  }
 0x214   :  { %2461 = vmatpush2.bf16.msra.mxu1 %v3921_v35  ;;  %v3953_v35 = vld [vmem:[#allocation8 + $0x90] sm:$0xff]  }
 0x215   :  { %2462 = vmatprep.subr.bf16.mxu1 %v3928_v38  ;;  %v3955_v38 = vld [vmem:[#allocation8 + $0x88] sm:$0xff]  }
 0x218   :  { %2463 = vmatpush2.bf16.msra.mxu1 %v3926_v41  ;;  %v3956_v41 = vld [vmem:[#allocation8 + $0xc0] sm:$0xff]  }
 0x219   :  { %2464 = vmatprep.subr.bf16.mxu1 %v3933_v44 }
 0x21c   :  { %2465 = vmatpush2.bf16.msra.mxu1 %v3931_v45 }
 0x21d   :  { %3450 = vmatprep.subr.bf16.mxu1 %v3958_v17 }
 0x21f   :  { %v2210_v55 = vpop.f32.mrf.mxu1  ;;  %2467 = vmatmul.mubr.bf16.vlgmr.msra.gmra.mxu1 %v4255_v18 }
 0x220   :  { %v2211_v3 = vadd.f32 %v2210_v55, %v2168_v63  ;;  %3451 = vmatpush3.bf16.msra.mxu1 %v3959_v52  ;;  %v631_v55 = vrot.slane %v4268_v48, %v123_v19 }
 0x221   :  { %v2212_v56 = vpop.f32.mrf.mxu1  ;;  %3452 = vmatprep.subr.bf16.mxu1 %v3960_v61 }
 0x222   :  { %v2213_v1 = vadd.f32 %v2212_v56, %v2170_v62  ;;  %v2477_v18 = vmax.f32 %v2211_v3, 0.0  ;;  %v3972_v62 = vld [vmem:[#allocation8 + $0x140] sm:$0xff]  }
 0x223   :  { %v2214_v12 = vpop.f32.mrf.mxu1 }
 0x224   :  { %v2215_v2 = vadd.f32 %v2214_v12, %v2172_v9  ;;  %v2478_v5 = vmax.f32 %v2213_v1, 0.0  ;;  %3453 = vmatpush3.bf16.msra.mxu1 %v3961_v22 }
 0x225   :  { %v2216_v13 = vpop.f32.mrf.mxu1  ;;  %3454 = vmatprep.subr.bf16.mxu1 %v3962_v24  ;;  %v643_v24 = vrot.slane %v4268_v48, %v135_v39 }
 0x226   :  { %v2217_v4 = vadd.f32 %v2216_v13, %v2174_v0  ;;  %v2483_v54 = vmax.f32 %v2215_v2, 0.0  ;;  %v3973_v0 = vld [vmem:[#allocation8 + $0x100] sm:$0xff]  }
 0x227   :  { %v2253_v43 = vpop.f32.mrf.mxu0 }
 0x228   :  { %v2484_v6 = vmax.f32 %v2217_v4, 0.0  ;;  %v2489_v8 = vpack.c.bf16 %v2483_v54, %v2477_v18  ;;  %3455 = vmatpush3.bf16.msra.mxu1 %v3963_v26  ;;  %v2254_v9 = vadd.f32 %v2253_v43, %v631_v55 }
 0x229   :  { %3456 = vmatprep.subr.bf16.mxu1 %v3964_v28  ;;  %v2255_v44 = vpop.f32.mrf.mxu0 }
 0x22a   :  { %v2490_v14 = vpack.c.bf16 %v2484_v6, %v2478_v5  ;;  %v2256_v56 = vadd.f32 %v2255_v44, %v635_v50 }
 0x22b   :  { %v2257_v47 = vpop.f32.mrf.mxu0 }
 0x22c   :  { %2918 = vmatprep.mubr.bf16.mxu0 %v2490_v14  ;;  %3457 = vmatpush3.bf16.msra.mxu1 %v3965_v30  ;;  %v2258_v40 = vadd.f32 %v2257_v47, %v631_v55 }
 0x22d   :  { %2919 = vmatmul.mubr.bf16.vlgmr.msra.gmra.mxu0 %v2489_v8  ;;  %3458 = vmatprep.subr.bf16.mxu1 %v3966_v32  ;;  %v2259_v57 = vpop.f32.mrf.mxu0 }
 0x22e   :  { %3429 = vmatpush3.bf16.msra.mxu0 %v3943_v7  ;;  %v2260_v1 = vadd.f32 %v2259_v57, %v635_v50 }
 0x22f   :  { %3430 = vmatprep.subr.bf16.mxu0 %v3944_v15 }
 0x230   :  { %3459 = vmatpush3.bf16.msra.mxu1 %v3967_v34 }
 0x231   :  { %3460 = vmatprep.subr.bf16.mxu1 %v3968_v46 }
 0x232   :  { %3431 = vmatpush3.bf16.msra.mxu0 %v3945_v16 }
 0x233   :  { %3432 = vmatprep.subr.bf16.mxu0 %v3946_v21 }
 0x234   :  { %3461 = vmatpush3.bf16.msra.mxu1 %v3969_v49 }
 0x235   :  { %3462 = vmatprep.subr.bf16.mxu1 %v3970_v51 }
 0x236   :  { %3433 = vmatpush3.bf16.msra.mxu0 %v3947_v23 }
 0x237   :  { %3434 = vmatprep.subr.bf16.mxu0 %v3948_v25  ;;  %v639_v25 = vrot.slane %v4268_v48, %v131_v53 }
 0x238   :  { %3463 = vmatpush3.bf16.msra.mxu1 %v3971_v59 }
 0x239   :  { %3464 = vmatprep.subr.bf16.mxu1 %v3972_v62 }
 0x23a   :  { %3435 = vmatpush3.bf16.msra.mxu0 %v3949_v27 }
 0x23b   :  { %3436 = vmatprep.subr.bf16.mxu0 %v3950_v29 }
 0x23c   :  { %3465 = vmatpush3.bf16.msra.mxu1 %v3973_v0 }
 0x23e   :  { %3437 = vmatpush3.bf16.msra.mxu0 %v3951_v31 }
 0x23f   :  { %3438 = vmatprep.subr.bf16.mxu0 %v3952_v33 }
 0x242   :  { %3439 = vmatpush3.bf16.msra.mxu0 %v3953_v35 }
 0x243   :  { %3440 = vmatprep.subr.bf16.mxu0 %v3954_v37 }
 0x246   :  { %3441 = vmatpush3.bf16.msra.mxu0 %v3955_v38 }
 0x247   :  { %3442 = vmatprep.subr.bf16.mxu0 %v3956_v41 }
 0x24a   :  { %3443 = vmatpush3.bf16.msra.mxu0 %v3957_v42 }
 0x25f   :  { %v2296_v45 = vpop.f32.mrf.mxu1 }
 0x260   :  { %v2297_v3 = vadd.f32 %v2296_v45, %v2254_v9 }
 0x261   :  { %v2298_v36 = vpop.f32.mrf.mxu1 }
 0x262   :  { %v2299_v20 = vadd.f32 %v2298_v36, %v2256_v56 }
 0x263   :  { %v2300_v58 = vpop.f32.mrf.mxu1 }
 0x264   :  { %v2301_v2 = vadd.f32 %v2300_v58, %v2258_v40  ;;  %v3348_v40 = vld [vmem:[#allocation11] ss:$0 sm:$0xff] }
 0x265   :  { %v2302_v63 = vpop.f32.mrf.mxu1 }
 0x266   :  { %v2303_v19 = vadd.f32 %v2302_v63, %v2260_v1 }
 0x267   :  { %v2339_v60 = vpop.f32.mrf.mxu0 }
 0x268   :  { %v2340_v5 = vadd.f32 %v2339_v60, %v2297_v3 }
 0x269   :  { %v2341_v12 = vpop.f32.mrf.mxu0 }
 0x26a   :  { %v2342_v4 = vadd.f32 %v2341_v12, %v2299_v20  ;;  %v2479_v15 = vmax.f32 %v2340_v5, 0.0 }
 0x26b   :  { %v2343_v13 = vpop.f32.mrf.mxu0 }
 0x26c   :  { %v2344_v54 = vadd.f32 %v2343_v13, %v2301_v2  ;;  %v2480_v7 = vmax.f32 %v2342_v4, 0.0 }
 0x26d   :  { %v2345_v6 = vpop.f32.mrf.mxu0 }
 0x26e   :  { %v2346_v18 = vadd.f32 %v2345_v6, %v2303_v19  ;;  %v2485_v14 = vmax.f32 %v2344_v54, 0.0  ;;  %v3010_v54 = vand.u32 127, %v113_v10 }
 0x270   :  { %v2486_v8 = vmax.f32 %v2346_v18, 0.0  ;;  %v2491_v17 = vpack.c.bf16 %v2485_v14, %v2479_v15  ;;  %vm3011_vm1 = vcmp.ge.s32.totalorder %v3010_v54, 4  ;;  %vm3012_vm2 = vcmp.lt.s32.totalorder %v3010_v54, 8 }
 0x271   :  { %vm3013_vm3 = vmand %vm3011_vm1, %vm3012_vm2 }
 0x272   :  { %v2492_v16 = vpack.c.bf16 %v2486_v8, %v2480_v7 }
 0x274   :  { %2959 = vmatprep.mubr.bf16.mxu0 %v2492_v16 }
 0x275   :  { %2960 = vmatmul.mubr.bf16.vlgmr.msra.gmra.mxu0 %v2491_v17 }
 0x29f   :  { %v2382_v52 = vpop.f32.mrf.mxu1 }
 0x2a0   :  { %v2383_v31 = vadd.f32 %v2382_v52, %v639_v25 }
 0x2a1   :  { %v2384_v61 = vpop.f32.mrf.mxu1 }
 0x2a2   :  { %v2385_v29 = vadd.f32 %v2384_v61, %v643_v24 }
 0x2a3   :  { %v2386_v22 = vpop.f32.mrf.mxu1 }
 0x2a4   :  { %v2387_v30 = vadd.f32 %v2386_v22, %v639_v25 }
 0x2a5   :  { %v2388_v26 = vpop.f32.mrf.mxu1 }
 0x2a6   :  { %v2389_v34 = vadd.f32 %v2388_v26, %v643_v24 }
 0x2a7   :  { %v2425_v21 = vpop.f32.mrf.mxu0 }
 0x2a8   :  { %v2426_v38 = vadd.f32 %v2425_v21, %v2383_v31 }
 0x2a9   :  { %v2427_v23 = vpop.f32.mrf.mxu0 }
 0x2aa   :  { %v2428_v35 = vadd.f32 %v2427_v23, %v2385_v29 }
 0x2ab   :  { %v2429_v27 = vpop.f32.mrf.mxu0 }
 0x2ac   :  { %v2430_v37 = vadd.f32 %v2429_v27, %v2387_v30 }
 0x2ad   :  { %v2431_v32 = vpop.f32.mrf.mxu0 }
 0x2ae   :  { %v2432_v42 = vadd.f32 %v2431_v32, %v2389_v34 }
 0x2df   :  { %v2468_v28 = vpop.f32.mrf.mxu1 }
 0x2e0   :  { %v2469_v44 = vadd.f32 %v2468_v28, %v2426_v38 }
 0x2e1   :  { %v2470_v33 = vpop.f32.mrf.mxu1 }
 0x2e2   :  { %v2471_v43 = vadd.f32 %v2470_v33, %v2428_v35  ;;  %v2481_v47 = vmax.f32 %v2469_v44, 0.0 }
 0x2e3   :  { %v2472_v41 = vpop.f32.mrf.mxu1 }
 0x2e4   :  { %v2473_v39 = vadd.f32 %v2472_v41, %v2430_v37  ;;  %v2482_v48 = vmax.f32 %v2471_v43, 0.0 }
 0x2e5   :  { %v2474_v11 = vpop.f32.mrf.mxu1 }
 0x2e6   :  { %v2475_v45 = vadd.f32 %v2474_v11, %v2432_v42  ;;  %v2487_v53 = vmax.f32 %v2473_v39, 0.0 }
 0x2e8   :  { %v2488_v46 = vmax.f32 %v2475_v45, 0.0  ;;  %v2493_v49 = vpack.c.bf16 %v2487_v53, %v2481_v47 }
 0x2ea   :  { %v2494_v36 = vpack.c.bf16 %v2488_v46, %v2482_v48 }
 0x2ec   :  { %3000 = vmatprep.mubr.bf16.mxu1 %v2494_v36 }
 0x2ed   :  { %3001 = vmatmul.mubr.bf16.vlgmr.msra.gmra.mxu1 %v2493_v49  ;;  %v3422_v50 = vpop.f32.mrf.mxu0 }
 0x2ef   :  { %v3423_v51 = vpop.f32.mrf.mxu0 }
 0x2f0   :  { %v3424_v56 = vadd.f32 %v3423_v51, %v3422_v50 }
 0x2f1   :  { %v3425_v55 = vpop.f32.mrf.mxu0 }
 0x2f2   :  { %v2921_v12 = vadd.f32 %v3424_v56, %v3348_v40 }
 0x2f3   :  { %v3426_v57 = vpop.f32.mrf.mxu0 }
 0x2f4   :  { %v3427_v0 = vadd.f32 %v3426_v57, %v3425_v55 }
 0x2f6   :  { %v2924_v19 = vadd.f32 %v3427_v0, %v3348_v40 }
 0x335   :  { %v3444_v58 = vpop.f32.mrf.mxu0 }
 0x337   :  { %v3445_v59 = vpop.f32.mrf.mxu0 }
 0x338   :  { %v3446_v62 = vadd.f32 %v3445_v59, %v3444_v58 }
 0x339   :  { %v3447_v60 = vpop.f32.mrf.mxu0 }
 0x33a   :  { %v2962_v20 = vadd.f32 %v3446_v62, %v2921_v12 }
 0x33b   :  { %v3448_v9 = vpop.f32.mrf.mxu0 }
 0x33c   :  { %v3449_v2 = vadd.f32 %v3448_v9, %v3447_v60 }
 0x33e   :  { %v2965_v6 = vadd.f32 %v3449_v2, %v2924_v19 }
 0x3ad   :  { %v3466_v63 = vpop.f32.mrf.mxu1 }
 0x3af   :  { %v3467_v1 = vpop.f32.mrf.mxu1 }
 0x3b0   :  { %v3468_v3 = vadd.f32 %v3467_v1, %v3466_v63 }
 0x3b1   :  { %v3469_v13 = vpop.f32.mrf.mxu1 }
 0x3b2   :  { %v3003_v4 = vadd.f32 %v3468_v3, %v2962_v20 }
 0x3b3   :  { %v3470_v5 = vpop.f32.mrf.mxu1 }
 0x3b4   :  { %v3014_v18 = vmax.f32 %v3003_v4, -20.0  ;;  %v3471_v14 = vadd.f32 %v3470_v5, %v3469_v13 }
 0x3b6   :  { %v3006_v7 = vadd.f32 %v3471_v14, %v2965_v6  ;;  %v3016_v8 = vmin.f32 %v3014_v18, 2.0 }
 0x3b8   :  { %v3015_v15 = vmax.f32 %v3006_v7, -20.0  ;;  %v3018_v17 = vsel %vm3013_vm3, %v3016_v8, %v3003_v4 }
 0x3ba   :  { %v3017_v16 = vmin.f32 %v3015_v15, 2.0 }
 0x3bc   :  { %v3019_v52 = vsel %vm3013_vm3, %v3017_v16, %v3006_v7 }
 0x3bd   :  { %v3404_v61 = vpack.c.bf16 %v3019_v52, %v3018_v17 }
 0x3bf   :  { %3405 = vst [vmem:[#allocation13] sm:$0xff] %v3404_v61  }
 0x3c0   :  { %4105 = shalt.err (!%p4102_p6)
}
 0x3c1   :  { %3041 = dma.vmem_to_hbm [thread:$0]  %s3036_s5, 128, %s4302_s6, [#allocation4], %s4129_s9, %s4129_s9, %s4130_s10  }
 0x3c2   :  { %4122 = dma.done.wait [#allocation4], 128  }
 0x3c3   :  { %4123 = vsyncadd [#allocation4], 4294967168 }
 0x3c4   :  { %3045 = vsyncpa [#allocation3], 1 }
 0x3c5   :  { %3046 = vsyncpa [#allocation6], 1 }
 0x3c6   :  { %3047 = vsyncpa [#allocation9], 1 }
 0x3c7   :  { %3048 = vsyncpa [#allocation12], 1 }
 0x3c8   :  { %3049 = vsyncpa [#allocation4], 1 }

</bundles_post_ra>
